<compile_context>
chip_gen: v5e
topology: v5e:2x2
jax: 0.10.0
libtpu: 0.0.40
codegen_flags: <defaults>
</compile_context>

<pallas_src>
import functools

import jax
import jax.numpy as jnp
import numpy as np
from jax import lax
from jax.experimental import pallas as pl
from jax.experimental.pallas import tpu as pltpu


def _aspp_kernel(x_ref, w_ref, m_ref, b_ref, o_ref, *, rates, H, W):
    """One batch element per grid step.

    x_ref : (Cinp, HW)      activations, channels on sublanes, spatial on lanes
    w_ref : (T, Cout, Cinp) per-tap weight blocks, T = len(rates) * 9
    m_ref : (T, Cinp, HW)   precomputed 0/1 border masks (replicated over Cinp)
    b_ref : (Cout, 1)       bias summed over rates
    o_ref : (Cout, HW)      lane-dense output
    """
    HW = H * W
    Cout = o_ref.shape[0]

    xf = x_ref[...].astype(jnp.float32)                      # (Cinp, HW)

    # Accumulator starts at the (rate-summed) bias -> no epilogue add.
    acc = jnp.broadcast_to(b_ref[...], (Cout, HW))           # f32 (Cout, HW)

    # Static (fully unrolled) tap loop: roll (XLU) + full-tile mask mul (VPU)
    # + one small K=Cinp MXU dot per tap, accumulated in registers.
    t = 0
    for rate in rates:
        for ky in range(3):
            dy = (ky - 1) * rate
            for kx in range(3):
                dx = (kx - 1) * rate
                s = dy * W + dx                              # static flat shift
                rolled = xf if s == 0 else pltpu.roll(xf, (-s) % HW, 1)
                tap = rolled * m_ref[t]                      # (Cinp, HW), full tiles
                acc = acc + jnp.dot(
                    w_ref[t], tap, preferred_element_type=jnp.float32
                )
                t += 1

    o_ref[...] = acc.astype(o_ref.dtype)


def aspp_forward(x_nchw, weights, biases, rates):
    """x_nchw: (N, Cin, H, W). weights: (R, 3, 3, Cin, Cout). biases: (R, Cout)."""
    N, Cin, H, W = x_nchw.shape
    R, _, _, _, Cout = weights.shape
    assert R == len(rates)
    HW = H * W
    T = R * 9
    Cinp = ((Cin + 7) // 8) * 8                              # 8-sublane aligned Cin

    # NCHW is channel-major: flattening (H, W) -> H*W is a free reshape.
    x_flat = x_nchw.reshape(N, Cin, HW)
    if Cinp != Cin:
        x_flat = jnp.pad(x_flat, ((0, 0), (0, Cinp - Cin), (0, 0)))

    # Per-tap weight blocks (T, Cout, Cinp), tap order (rate, ky, kx) matching
    # the kernel loops; padded input channels get zero weights.
    w_taps = jnp.transpose(weights.reshape(T, Cin, Cout), (0, 2, 1))  # (T, Cout, Cin)
    if Cinp != Cin:
        w_taps = jnp.pad(w_taps, ((0, 0), (0, 0), (0, Cinp - Cin)))
    w_taps = w_taps.astype(jnp.float32)

    # Bias pre-summed over rates.
    b_total = jnp.sum(biases, axis=0).reshape(Cout, 1).astype(jnp.float32)

    # Precompute combined border masks once (batch-invariant), replicated over
    # Cinp rows so the in-kernel mask application is a full-tile mul with no
    # per-tap broadcast_in_dim.
    pos = np.arange(HW)
    hh = pos // W
    ww = pos % W
    rows = []
    for rate in rates:
        for ky in range(3):
            dy = (ky - 1) * rate
            for kx in range(3):
                dx = (kx - 1) * rate
                rows.append(
                    (hh + dy >= 0) & (hh + dy < H) & (ww + dx >= 0) & (ww + dx < W)
                )
    mask_np = np.stack(rows).astype(np.float32)              # (T, HW)
    mask_np = np.ascontiguousarray(
        np.broadcast_to(mask_np[:, None, :], (T, Cinp, HW))
    )
    mask_dev = jnp.asarray(mask_np)                          # (T, Cinp, HW)

    kernel = functools.partial(_aspp_kernel, rates=tuple(rates), H=H, W=W)

    out_flat = pl.pallas_call(
        kernel,
        out_shape=jax.ShapeDtypeStruct((N, Cout, HW), x_nchw.dtype),
        grid_spec=pltpu.PrefetchScalarGridSpec(
            num_scalar_prefetch=0,
            grid=(N,),
            in_specs=[
                pl.BlockSpec((None, Cinp, HW), lambda n: (n, 0, 0)),   # x
                pl.BlockSpec((T, Cout, Cinp), lambda n: (0, 0, 0)),    # weights
                pl.BlockSpec((T, Cinp, HW), lambda n: (0, 0, 0)),      # masks
                pl.BlockSpec((Cout, 1), lambda n: (0, 0)),             # bias
            ],
            out_specs=pl.BlockSpec((None, Cout, HW), lambda n: (n, 0, 0)),
        ),
        compiler_params=pltpu.CompilerParams(dimension_semantics=("parallel",)),
    )(x_flat, w_taps, mask_dev, b_total)

    # Free reshape back to NCHW to match the PyTorch output convention.
    return out_flat.reshape(N, Cout, H, W)


def aspp_reference(x_nchw, weights, biases, rates):
    """Plain-JAX reference using lax.conv_general_dilated (NCHW, OIHW)."""
    out = None
    for ri, rate in enumerate(rates):
        w_oihw = jnp.transpose(weights[ri], (3, 2, 0, 1))    # (3,3,Cin,Cout) -> (Cout,Cin,3,3)
        y = lax.conv_general_dilated(
            x_nchw, w_oihw,
            window_strides=(1, 1),
            padding=((rate, rate), (rate, rate)),
            rhs_dilation=(rate, rate),
            dimension_numbers=("NCHW", "OIHW", "NCHW"),
        ) + biases[ri][None, :, None, None]
        out = y if out is None else out + y
    return out


if __name__ == "__main__":
    # Small shapes consistent with the module: batch=2, in_ch=4, out_ch=4, spatial=16.
    N, Cin, Cout, H, W = 2, 4, 4, 16, 16
    rates = (1, 2, 4)
    R = len(rates)

    key = jax.random.PRNGKey(0)
    kx, kw = jax.random.split(key)

    x = jax.random.normal(kx, (N, Cin, H, W), dtype=jnp.float32)
    # nn.init.normal_(weight, mean=0, std=0.01); nn.init.constant_(bias, 0)
    weights = 0.01 * jax.random.normal(kw, (R, 3, 3, Cin, Cout), dtype=jnp.float32)
    biases = jnp.zeros((R, Cout), dtype=jnp.float32)

    out = aspp_forward(x, weights, biases, rates)
    out = jax.block_until_ready(out)

    ref = jax.block_until_ready(aspp_reference(x, weights, biases, rates))
    assert out.shape == (N, Cout, H, W)
    np.testing.assert_allclose(np.asarray(out), np.asarray(ref), rtol=1e-4, atol=1e-5)

    print("KERNEL_OK")
</pallas_src>

<mosaic_0001>
module attributes {stable_mosaic.version = 11 : i64} {
  func.func @_aspp_kernel(%arg0: i32, %arg1: memref<1x8x256xf32, #tpu.memory_space<vmem>>, %arg2: memref<27x4x8xf32, #tpu.memory_space<vmem>>, %arg3: memref<27x8x256xf32, #tpu.memory_space<vmem>>, %arg4: memref<4x1xf32, #tpu.memory_space<vmem>>, %arg5: memref<1x4x256xf32, #tpu.memory_space<vmem>>) attributes {dimension_semantics = [#tpu.dimension_semantics<parallel>], iteration_bounds = array<i64: 2>, scalar_prefetch = 0 : i64, scratch_operands = 0 : i64, tpu.core_type = #tpu.core_type<tc>, window_params = [{transform_indices = @transform_0, window_bounds = array<i64: 1, 8, 256>}, {pipeline_mode = #tpu.pipeline_mode<synchronous>, transform_indices = @transform_1, window_bounds = array<i64: 27, 4, 8>}, {pipeline_mode = #tpu.pipeline_mode<synchronous>, transform_indices = @transform_2, window_bounds = array<i64: 27, 8, 256>}, {pipeline_mode = #tpu.pipeline_mode<synchronous>, transform_indices = @transform_3, window_bounds = array<i64: 4, 1>}, {transform_indices = @transform_4, window_bounds = array<i64: 1, 4, 256>}]} {
    %c0 = arith.constant 0 : index
    %c0_0 = arith.constant 0 : index
    %c0_1 = arith.constant 0 : index
    %0 = vector.load %arg1[%c0, %c0_0, %c0_1] : memref<1x8x256xf32, #tpu.memory_space<vmem>>, vector<1x8x256xf32>
    %1 = vector.shape_cast %0 : vector<1x8x256xf32> to vector<8x256xf32>
    %c0_2 = arith.constant 0 : index
    %c0_3 = arith.constant 0 : index
    %2 = vector.load %arg4[%c0_2, %c0_3] : memref<4x1xf32, #tpu.memory_space<vmem>>, vector<4x1xf32>
    %3 = vector.shape_cast %2 : vector<4x1xf32> to vector<4x1xf32>
    %4 = vector.broadcast %3 : vector<4x1xf32> to vector<4x256xf32>
    %c17_i32 = arith.constant 17 : i32
    %5 = tpu.dynamic_rotate %1 by %c17_i32 dim 1 : vector<8x256xf32>, i32 -> vector<8x256xf32>
    %c0_4 = arith.constant 0 : index
    %c0_5 = arith.constant 0 : index
    %c0_6 = arith.constant 0 : index
    %6 = vector.load %arg3[%c0_4, %c0_5, %c0_6] : memref<27x8x256xf32, #tpu.memory_space<vmem>>, vector<1x8x256xf32>
    %7 = vector.shape_cast %6 : vector<1x8x256xf32> to vector<8x256xf32>
    %8 = arith.mulf %5, %7 : vector<8x256xf32>
    %c0_7 = arith.constant 0 : index
    %c0_8 = arith.constant 0 : index
    %c0_9 = arith.constant 0 : index
    %9 = vector.load %arg2[%c0_7, %c0_8, %c0_9] : memref<27x4x8xf32, #tpu.memory_space<vmem>>, vector<1x4x8xf32>
    %10 = vector.shape_cast %9 : vector<1x4x8xf32> to vector<4x8xf32>
    %cst = arith.constant dense<0.000000e+00> : vector<4x256xf32>
    %11 = tpu.matmul %10, %8, %cst {dimension_numbers = #tpu.dot_dimension_numbers<[1], [0], [0], [1], [0, 0, 1, 1], [], []>} : vector<4x8xf32>, vector<8x256xf32>, vector<4x256xf32> -> vector<4x256xf32>
    %12 = arith.addf %4, %11 : vector<4x256xf32>
    %c16_i32 = arith.constant 16 : i32
    %13 = tpu.dynamic_rotate %1 by %c16_i32 dim 1 : vector<8x256xf32>, i32 -> vector<8x256xf32>
    %c1 = arith.constant 1 : index
    %c0_10 = arith.constant 0 : index
    %c0_11 = arith.constant 0 : index
    %14 = vector.load %arg3[%c1, %c0_10, %c0_11] : memref<27x8x256xf32, #tpu.memory_space<vmem>>, vector<1x8x256xf32>
    %15 = vector.shape_cast %14 : vector<1x8x256xf32> to vector<8x256xf32>
    %16 = arith.mulf %13, %15 : vector<8x256xf32>
    %c1_12 = arith.constant 1 : index
    %c0_13 = arith.constant 0 : index
    %c0_14 = arith.constant 0 : index
    %17 = vector.load %arg2[%c1_12, %c0_13, %c0_14] : memref<27x4x8xf32, #tpu.memory_space<vmem>>, vector<1x4x8xf32>
    %18 = vector.shape_cast %17 : vector<1x4x8xf32> to vector<4x8xf32>
    %cst_15 = arith.constant dense<0.000000e+00> : vector<4x256xf32>
    %19 = tpu.matmul %18, %16, %cst_15 {dimension_numbers = #tpu.dot_dimension_numbers<[1], [0], [0], [1], [0, 0, 1, 1], [], []>} : vector<4x8xf32>, vector<8x256xf32>, vector<4x256xf32> -> vector<4x256xf32>
    %20 = arith.addf %12, %19 : vector<4x256xf32>
    %c15_i32 = arith.constant 15 : i32
    %21 = tpu.dynamic_rotate %1 by %c15_i32 dim 1 : vector<8x256xf32>, i32 -> vector<8x256xf32>
    %c2 = arith.constant 2 : index
    %c0_16 = arith.constant 0 : index
    %c0_17 = arith.constant 0 : index
    %22 = vector.load %arg3[%c2, %c0_16, %c0_17] : memref<27x8x256xf32, #tpu.memory_space<vmem>>, vector<1x8x256xf32>
    %23 = vector.shape_cast %22 : vector<1x8x256xf32> to vector<8x256xf32>
    %24 = arith.mulf %21, %23 : vector<8x256xf32>
    %c2_18 = arith.constant 2 : index
    %c0_19 = arith.constant 0 : index
    %c0_20 = arith.constant 0 : index
    %25 = vector.load %arg2[%c2_18, %c0_19, %c0_20] : memref<27x4x8xf32, #tpu.memory_space<vmem>>, vector<1x4x8xf32>
    %26 = vector.shape_cast %25 : vector<1x4x8xf32> to vector<4x8xf32>
    %cst_21 = arith.constant dense<0.000000e+00> : vector<4x256xf32>
    %27 = tpu.matmul %26, %24, %cst_21 {dimension_numbers = #tpu.dot_dimension_numbers<[1], [0], [0], [1], [0, 0, 1, 1], [], []>} : vector<4x8xf32>, vector<8x256xf32>, vector<4x256xf32> -> vector<4x256xf32>
    %28 = arith.addf %20, %27 : vector<4x256xf32>
    %c1_i32 = arith.constant 1 : i32
    %29 = tpu.dynamic_rotate %1 by %c1_i32 dim 1 : vector<8x256xf32>, i32 -> vector<8x256xf32>
    %c3 = arith.constant 3 : index
    %c0_22 = arith.constant 0 : index
    %c0_23 = arith.constant 0 : index
    %30 = vector.load %arg3[%c3, %c0_22, %c0_23] : memref<27x8x256xf32, #tpu.memory_space<vmem>>, vector<1x8x256xf32>
    %31 = vector.shape_cast %30 : vector<1x8x256xf32> to vector<8x256xf32>
    %32 = arith.mulf %29, %31 : vector<8x256xf32>
    %c3_24 = arith.constant 3 : index
    %c0_25 = arith.constant 0 : index
    %c0_26 = arith.constant 0 : index
    %33 = vector.load %arg2[%c3_24, %c0_25, %c0_26] : memref<27x4x8xf32, #tpu.memory_space<vmem>>, vector<1x4x8xf32>
    %34 = vector.shape_cast %33 : vector<1x4x8xf32> to vector<4x8xf32>
    %cst_27 = arith.constant dense<0.000000e+00> : vector<4x256xf32>
    %35 = tpu.matmul %34, %32, %cst_27 {dimension_numbers = #tpu.dot_dimension_numbers<[1], [0], [0], [1], [0, 0, 1, 1], [], []>} : vector<4x8xf32>, vector<8x256xf32>, vector<4x256xf32> -> vector<4x256xf32>
    %36 = arith.addf %28, %35 : vector<4x256xf32>
    %c4 = arith.constant 4 : index
    %c0_28 = arith.constant 0 : index
    %c0_29 = arith.constant 0 : index
    %37 = vector.load %arg3[%c4, %c0_28, %c0_29] : memref<27x8x256xf32, #tpu.memory_space<vmem>>, vector<1x8x256xf32>
    %38 = vector.shape_cast %37 : vector<1x8x256xf32> to vector<8x256xf32>
    %39 = arith.mulf %1, %38 : vector<8x256xf32>
    %c4_30 = arith.constant 4 : index
    %c0_31 = arith.constant 0 : index
    %c0_32 = arith.constant 0 : index
    %40 = vector.load %arg2[%c4_30, %c0_31, %c0_32] : memref<27x4x8xf32, #tpu.memory_space<vmem>>, vector<1x4x8xf32>
    %41 = vector.shape_cast %40 : vector<1x4x8xf32> to vector<4x8xf32>
    %cst_33 = arith.constant dense<0.000000e+00> : vector<4x256xf32>
    %42 = tpu.matmul %41, %39, %cst_33 {dimension_numbers = #tpu.dot_dimension_numbers<[1], [0], [0], [1], [0, 0, 1, 1], [], []>} : vector<4x8xf32>, vector<8x256xf32>, vector<4x256xf32> -> vector<4x256xf32>
    %43 = arith.addf %36, %42 : vector<4x256xf32>
    %c255_i32 = arith.constant 255 : i32
    %44 = tpu.dynamic_rotate %1 by %c255_i32 dim 1 : vector<8x256xf32>, i32 -> vector<8x256xf32>
    %c5 = arith.constant 5 : index
    %c0_34 = arith.constant 0 : index
    %c0_35 = arith.constant 0 : index
    %45 = vector.load %arg3[%c5, %c0_34, %c0_35] : memref<27x8x256xf32, #tpu.memory_space<vmem>>, vector<1x8x256xf32>
    %46 = vector.shape_cast %45 : vector<1x8x256xf32> to vector<8x256xf32>
    %47 = arith.mulf %44, %46 : vector<8x256xf32>
    %c5_36 = arith.constant 5 : index
    %c0_37 = arith.constant 0 : index
    %c0_38 = arith.constant 0 : index
    %48 = vector.load %arg2[%c5_36, %c0_37, %c0_38] : memref<27x4x8xf32, #tpu.memory_space<vmem>>, vector<1x4x8xf32>
    %49 = vector.shape_cast %48 : vector<1x4x8xf32> to vector<4x8xf32>
    %cst_39 = arith.constant dense<0.000000e+00> : vector<4x256xf32>
    %50 = tpu.matmul %49, %47, %cst_39 {dimension_numbers = #tpu.dot_dimension_numbers<[1], [0], [0], [1], [0, 0, 1, 1], [], []>} : vector<4x8xf32>, vector<8x256xf32>, vector<4x256xf32> -> vector<4x256xf32>
    %51 = arith.addf %43, %50 : vector<4x256xf32>
    %c241_i32 = arith.constant 241 : i32
    %52 = tpu.dynamic_rotate %1 by %c241_i32 dim 1 : vector<8x256xf32>, i32 -> vector<8x256xf32>
    %c6 = arith.constant 6 : index
    %c0_40 = arith.constant 0 : index
    %c0_41 = arith.constant 0 : index
    %53 = vector.load %arg3[%c6, %c0_40, %c0_41] : memref<27x8x256xf32, #tpu.memory_space<vmem>>, vector<1x8x256xf32>
    %54 = vector.shape_cast %53 : vector<1x8x256xf32> to vector<8x256xf32>
    %55 = arith.mulf %52, %54 : vector<8x256xf32>
    %c6_42 = arith.constant 6 : index
    %c0_43 = arith.constant 0 : index
    %c0_44 = arith.constant 0 : index
    %56 = vector.load %arg2[%c6_42, %c0_43, %c0_44] : memref<27x4x8xf32, #tpu.memory_space<vmem>>, vector<1x4x8xf32>
    %57 = vector.shape_cast %56 : vector<1x4x8xf32> to vector<4x8xf32>
    %cst_45 = arith.constant dense<0.000000e+00> : vector<4x256xf32>
    %58 = tpu.matmul %57, %55, %cst_45 {dimension_numbers = #tpu.dot_dimension_numbers<[1], [0], [0], [1], [0, 0, 1, 1], [], []>} : vector<4x8xf32>, vector<8x256xf32>, vector<4x256xf32> -> vector<4x256xf32>
    %59 = arith.addf %51, %58 : vector<4x256xf32>
    %c240_i32 = arith.constant 240 : i32
    %60 = tpu.dynamic_rotate %1 by %c240_i32 dim 1 : vector<8x256xf32>, i32 -> vector<8x256xf32>
    %c7 = arith.constant 7 : index
    %c0_46 = arith.constant 0 : index
    %c0_47 = arith.constant 0 : index
    %61 = vector.load %arg3[%c7, %c0_46, %c0_47] : memref<27x8x256xf32, #tpu.memory_space<vmem>>, vector<1x8x256xf32>
    %62 = vector.shape_cast %61 : vector<1x8x256xf32> to vector<8x256xf32>
    %63 = arith.mulf %60, %62 : vector<8x256xf32>
    %c7_48 = arith.constant 7 : index
    %c0_49 = arith.constant 0 : index
    %c0_50 = arith.constant 0 : index
    %64 = vector.load %arg2[%c7_48, %c0_49, %c0_50] : memref<27x4x8xf32, #tpu.memory_space<vmem>>, vector<1x4x8xf32>
    %65 = vector.shape_cast %64 : vector<1x4x8xf32> to vector<4x8xf32>
    %cst_51 = arith.constant dense<0.000000e+00> : vector<4x256xf32>
    %66 = tpu.matmul %65, %63, %cst_51 {dimension_numbers = #tpu.dot_dimension_numbers<[1], [0], [0], [1], [0, 0, 1, 1], [], []>} : vector<4x8xf32>, vector<8x256xf32>, vector<4x256xf32> -> vector<4x256xf32>
    %67 = arith.addf %59, %66 : vector<4x256xf32>
    %c239_i32 = arith.constant 239 : i32
    %68 = tpu.dynamic_rotate %1 by %c239_i32 dim 1 : vector<8x256xf32>, i32 -> vector<8x256xf32>
    %c8 = arith.constant 8 : index
    %c0_52 = arith.constant 0 : index
    %c0_53 = arith.constant 0 : index
    %69 = vector.load %arg3[%c8, %c0_52, %c0_53] : memref<27x8x256xf32, #tpu.memory_space<vmem>>, vector<1x8x256xf32>
    %70 = vector.shape_cast %69 : vector<1x8x256xf32> to vector<8x256xf32>
    %71 = arith.mulf %68, %70 : vector<8x256xf32>
    %c8_54 = arith.constant 8 : index
    %c0_55 = arith.constant 0 : index
    %c0_56 = arith.constant 0 : index
    %72 = vector.load %arg2[%c8_54, %c0_55, %c0_56] : memref<27x4x8xf32, #tpu.memory_space<vmem>>, vector<1x4x8xf32>
    %73 = vector.shape_cast %72 : vector<1x4x8xf32> to vector<4x8xf32>
    %cst_57 = arith.constant dense<0.000000e+00> : vector<4x256xf32>
    %74 = tpu.matmul %73, %71, %cst_57 {dimension_numbers = #tpu.dot_dimension_numbers<[1], [0], [0], [1], [0, 0, 1, 1], [], []>} : vector<4x8xf32>, vector<8x256xf32>, vector<4x256xf32> -> vector<4x256xf32>
    %75 = arith.addf %67, %74 : vector<4x256xf32>
    %c34_i32 = arith.constant 34 : i32
    %76 = tpu.dynamic_rotate %1 by %c34_i32 dim 1 : vector<8x256xf32>, i32 -> vector<8x256xf32>
    %c9 = arith.constant 9 : index
    %c0_58 = arith.constant 0 : index
    %c0_59 = arith.constant 0 : index
    %77 = vector.load %arg3[%c9, %c0_58, %c0_59] : memref<27x8x256xf32, #tpu.memory_space<vmem>>, vector<1x8x256xf32>
    %78 = vector.shape_cast %77 : vector<1x8x256xf32> to vector<8x256xf32>
    %79 = arith.mulf %76, %78 : vector<8x256xf32>
    %c9_60 = arith.constant 9 : index
    %c0_61 = arith.constant 0 : index
    %c0_62 = arith.constant 0 : index
    %80 = vector.load %arg2[%c9_60, %c0_61, %c0_62] : memref<27x4x8xf32, #tpu.memory_space<vmem>>, vector<1x4x8xf32>
    %81 = vector.shape_cast %80 : vector<1x4x8xf32> to vector<4x8xf32>
    %cst_63 = arith.constant dense<0.000000e+00> : vector<4x256xf32>
    %82 = tpu.matmul %81, %79, %cst_63 {dimension_numbers = #tpu.dot_dimension_numbers<[1], [0], [0], [1], [0, 0, 1, 1], [], []>} : vector<4x8xf32>, vector<8x256xf32>, vector<4x256xf32> -> vector<4x256xf32>
    %83 = arith.addf %75, %82 : vector<4x256xf32>
    %c32_i32 = arith.constant 32 : i32
    %84 = tpu.dynamic_rotate %1 by %c32_i32 dim 1 : vector<8x256xf32>, i32 -> vector<8x256xf32>
    %c10 = arith.constant 10 : index
    %c0_64 = arith.constant 0 : index
    %c0_65 = arith.constant 0 : index
    %85 = vector.load %arg3[%c10, %c0_64, %c0_65] : memref<27x8x256xf32, #tpu.memory_space<vmem>>, vector<1x8x256xf32>
    %86 = vector.shape_cast %85 : vector<1x8x256xf32> to vector<8x256xf32>
    %87 = arith.mulf %84, %86 : vector<8x256xf32>
    %c10_66 = arith.constant 10 : index
    %c0_67 = arith.constant 0 : index
    %c0_68 = arith.constant 0 : index
    %88 = vector.load %arg2[%c10_66, %c0_67, %c0_68] : memref<27x4x8xf32, #tpu.memory_space<vmem>>, vector<1x4x8xf32>
    %89 = vector.shape_cast %88 : vector<1x4x8xf32> to vector<4x8xf32>
    %cst_69 = arith.constant dense<0.000000e+00> : vector<4x256xf32>
    %90 = tpu.matmul %89, %87, %cst_69 {dimension_numbers = #tpu.dot_dimension_numbers<[1], [0], [0], [1], [0, 0, 1, 1], [], []>} : vector<4x8xf32>, vector<8x256xf32>, vector<4x256xf32> -> vector<4x256xf32>
    %91 = arith.addf %83, %90 : vector<4x256xf32>
    %c30_i32 = arith.constant 30 : i32
    %92 = tpu.dynamic_rotate %1 by %c30_i32 dim 1 : vector<8x256xf32>, i32 -> vector<8x256xf32>
    %c11 = arith.constant 11 : index
    %c0_70 = arith.constant 0 : index
    %c0_71 = arith.constant 0 : index
    %93 = vector.load %arg3[%c11, %c0_70, %c0_71] : memref<27x8x256xf32, #tpu.memory_space<vmem>>, vector<1x8x256xf32>
    %94 = vector.shape_cast %93 : vector<1x8x256xf32> to vector<8x256xf32>
    %95 = arith.mulf %92, %94 : vector<8x256xf32>
    %c11_72 = arith.constant 11 : index
    %c0_73 = arith.constant 0 : index
    %c0_74 = arith.constant 0 : index
    %96 = vector.load %arg2[%c11_72, %c0_73, %c0_74] : memref<27x4x8xf32, #tpu.memory_space<vmem>>, vector<1x4x8xf32>
    %97 = vector.shape_cast %96 : vector<1x4x8xf32> to vector<4x8xf32>
    %cst_75 = arith.constant dense<0.000000e+00> : vector<4x256xf32>
    %98 = tpu.matmul %97, %95, %cst_75 {dimension_numbers = #tpu.dot_dimension_numbers<[1], [0], [0], [1], [0, 0, 1, 1], [], []>} : vector<4x8xf32>, vector<8x256xf32>, vector<4x256xf32> -> vector<4x256xf32>
    %99 = arith.addf %91, %98 : vector<4x256xf32>
    %c2_i32 = arith.constant 2 : i32
    %100 = tpu.dynamic_rotate %1 by %c2_i32 dim 1 : vector<8x256xf32>, i32 -> vector<8x256xf32>
    %c12 = arith.constant 12 : index
    %c0_76 = arith.constant 0 : index
    %c0_77 = arith.constant 0 : index
    %101 = vector.load %arg3[%c12, %c0_76, %c0_77] : memref<27x8x256xf32, #tpu.memory_space<vmem>>, vector<1x8x256xf32>
    %102 = vector.shape_cast %101 : vector<1x8x256xf32> to vector<8x256xf32>
    %103 = arith.mulf %100, %102 : vector<8x256xf32>
    %c12_78 = arith.constant 12 : index
    %c0_79 = arith.constant 0 : index
    %c0_80 = arith.constant 0 : index
    %104 = vector.load %arg2[%c12_78, %c0_79, %c0_80] : memref<27x4x8xf32, #tpu.memory_space<vmem>>, vector<1x4x8xf32>
    %105 = vector.shape_cast %104 : vector<1x4x8xf32> to vector<4x8xf32>
    %cst_81 = arith.constant dense<0.000000e+00> : vector<4x256xf32>
    %106 = tpu.matmul %105, %103, %cst_81 {dimension_numbers = #tpu.dot_dimension_numbers<[1], [0], [0], [1], [0, 0, 1, 1], [], []>} : vector<4x8xf32>, vector<8x256xf32>, vector<4x256xf32> -> vector<4x256xf32>
    %107 = arith.addf %99, %106 : vector<4x256xf32>
    %c13 = arith.constant 13 : index
    %c0_82 = arith.constant 0 : index
    %c0_83 = arith.constant 0 : index
    %108 = vector.load %arg3[%c13, %c0_82, %c0_83] : memref<27x8x256xf32, #tpu.memory_space<vmem>>, vector<1x8x256xf32>
    %109 = vector.shape_cast %108 : vector<1x8x256xf32> to vector<8x256xf32>
    %110 = arith.mulf %1, %109 : vector<8x256xf32>
    %c13_84 = arith.constant 13 : index
    %c0_85 = arith.constant 0 : index
    %c0_86 = arith.constant 0 : index
    %111 = vector.load %arg2[%c13_84, %c0_85, %c0_86] : memref<27x4x8xf32, #tpu.memory_space<vmem>>, vector<1x4x8xf32>
    %112 = vector.shape_cast %111 : vector<1x4x8xf32> to vector<4x8xf32>
    %cst_87 = arith.constant dense<0.000000e+00> : vector<4x256xf32>
    %113 = tpu.matmul %112, %110, %cst_87 {dimension_numbers = #tpu.dot_dimension_numbers<[1], [0], [0], [1], [0, 0, 1, 1], [], []>} : vector<4x8xf32>, vector<8x256xf32>, vector<4x256xf32> -> vector<4x256xf32>
    %114 = arith.addf %107, %113 : vector<4x256xf32>
    %c254_i32 = arith.constant 254 : i32
    %115 = tpu.dynamic_rotate %1 by %c254_i32 dim 1 : vector<8x256xf32>, i32 -> vector<8x256xf32>
    %c14 = arith.constant 14 : index
    %c0_88 = arith.constant 0 : index
    %c0_89 = arith.constant 0 : index
    %116 = vector.load %arg3[%c14, %c0_88, %c0_89] : memref<27x8x256xf32, #tpu.memory_space<vmem>>, vector<1x8x256xf32>
    %117 = vector.shape_cast %116 : vector<1x8x256xf32> to vector<8x256xf32>
    %118 = arith.mulf %115, %117 : vector<8x256xf32>
    %c14_90 = arith.constant 14 : index
    %c0_91 = arith.constant 0 : index
    %c0_92 = arith.constant 0 : index
    %119 = vector.load %arg2[%c14_90, %c0_91, %c0_92] : memref<27x4x8xf32, #tpu.memory_space<vmem>>, vector<1x4x8xf32>
    %120 = vector.shape_cast %119 : vector<1x4x8xf32> to vector<4x8xf32>
    %cst_93 = arith.constant dense<0.000000e+00> : vector<4x256xf32>
    %121 = tpu.matmul %120, %118, %cst_93 {dimension_numbers = #tpu.dot_dimension_numbers<[1], [0], [0], [1], [0, 0, 1, 1], [], []>} : vector<4x8xf32>, vector<8x256xf32>, vector<4x256xf32> -> vector<4x256xf32>
    %122 = arith.addf %114, %121 : vector<4x256xf32>
    %c226_i32 = arith.constant 226 : i32
    %123 = tpu.dynamic_rotate %1 by %c226_i32 dim 1 : vector<8x256xf32>, i32 -> vector<8x256xf32>
    %c15 = arith.constant 15 : index
    %c0_94 = arith.constant 0 : index
    %c0_95 = arith.constant 0 : index
    %124 = vector.load %arg3[%c15, %c0_94, %c0_95] : memref<27x8x256xf32, #tpu.memory_space<vmem>>, vector<1x8x256xf32>
    %125 = vector.shape_cast %124 : vector<1x8x256xf32> to vector<8x256xf32>
    %126 = arith.mulf %123, %125 : vector<8x256xf32>
    %c15_96 = arith.constant 15 : index
    %c0_97 = arith.constant 0 : index
    %c0_98 = arith.constant 0 : index
    %127 = vector.load %arg2[%c15_96, %c0_97, %c0_98] : memref<27x4x8xf32, #tpu.memory_space<vmem>>, vector<1x4x8xf32>
    %128 = vector.shape_cast %127 : vector<1x4x8xf32> to vector<4x8xf32>
    %cst_99 = arith.constant dense<0.000000e+00> : vector<4x256xf32>
    %129 = tpu.matmul %128, %126, %cst_99 {dimension_numbers = #tpu.dot_dimension_numbers<[1], [0], [0], [1], [0, 0, 1, 1], [], []>} : vector<4x8xf32>, vector<8x256xf32>, vector<4x256xf32> -> vector<4x256xf32>
    %130 = arith.addf %122, %129 : vector<4x256xf32>
    %c224_i32 = arith.constant 224 : i32
    %131 = tpu.dynamic_rotate %1 by %c224_i32 dim 1 : vector<8x256xf32>, i32 -> vector<8x256xf32>
    %c16 = arith.constant 16 : index
    %c0_100 = arith.constant 0 : index
    %c0_101 = arith.constant 0 : index
    %132 = vector.load %arg3[%c16, %c0_100, %c0_101] : memref<27x8x256xf32, #tpu.memory_space<vmem>>, vector<1x8x256xf32>
    %133 = vector.shape_cast %132 : vector<1x8x256xf32> to vector<8x256xf32>
    %134 = arith.mulf %131, %133 : vector<8x256xf32>
    %c16_102 = arith.constant 16 : index
    %c0_103 = arith.constant 0 : index
    %c0_104 = arith.constant 0 : index
    %135 = vector.load %arg2[%c16_102, %c0_103, %c0_104] : memref<27x4x8xf32, #tpu.memory_space<vmem>>, vector<1x4x8xf32>
    %136 = vector.shape_cast %135 : vector<1x4x8xf32> to vector<4x8xf32>
    %cst_105 = arith.constant dense<0.000000e+00> : vector<4x256xf32>
    %137 = tpu.matmul %136, %134, %cst_105 {dimension_numbers = #tpu.dot_dimension_numbers<[1], [0], [0], [1], [0, 0, 1, 1], [], []>} : vector<4x8xf32>, vector<8x256xf32>, vector<4x256xf32> -> vector<4x256xf32>
    %138 = arith.addf %130, %137 : vector<4x256xf32>
    %c222_i32 = arith.constant 222 : i32
    %139 = tpu.dynamic_rotate %1 by %c222_i32 dim 1 : vector<8x256xf32>, i32 -> vector<8x256xf32>
    %c17 = arith.constant 17 : index
    %c0_106 = arith.constant 0 : index
    %c0_107 = arith.constant 0 : index
    %140 = vector.load %arg3[%c17, %c0_106, %c0_107] : memref<27x8x256xf32, #tpu.memory_space<vmem>>, vector<1x8x256xf32>
    %141 = vector.shape_cast %140 : vector<1x8x256xf32> to vector<8x256xf32>
    %142 = arith.mulf %139, %141 : vector<8x256xf32>
    %c17_108 = arith.constant 17 : index
    %c0_109 = arith.constant 0 : index
    %c0_110 = arith.constant 0 : index
    %143 = vector.load %arg2[%c17_108, %c0_109, %c0_110] : memref<27x4x8xf32, #tpu.memory_space<vmem>>, vector<1x4x8xf32>
    %144 = vector.shape_cast %143 : vector<1x4x8xf32> to vector<4x8xf32>
    %cst_111 = arith.constant dense<0.000000e+00> : vector<4x256xf32>
    %145 = tpu.matmul %144, %142, %cst_111 {dimension_numbers = #tpu.dot_dimension_numbers<[1], [0], [0], [1], [0, 0, 1, 1], [], []>} : vector<4x8xf32>, vector<8x256xf32>, vector<4x256xf32> -> vector<4x256xf32>
    %146 = arith.addf %138, %145 : vector<4x256xf32>
    %c68_i32 = arith.constant 68 : i32
    %147 = tpu.dynamic_rotate %1 by %c68_i32 dim 1 : vector<8x256xf32>, i32 -> vector<8x256xf32>
    %c18 = arith.constant 18 : index
    %c0_112 = arith.constant 0 : index
    %c0_113 = arith.constant 0 : index
    %148 = vector.load %arg3[%c18, %c0_112, %c0_113] : memref<27x8x256xf32, #tpu.memory_space<vmem>>, vector<1x8x256xf32>
    %149 = vector.shape_cast %148 : vector<1x8x256xf32> to vector<8x256xf32>
    %150 = arith.mulf %147, %149 : vector<8x256xf32>
    %c18_114 = arith.constant 18 : index
    %c0_115 = arith.constant 0 : index
    %c0_116 = arith.constant 0 : index
    %151 = vector.load %arg2[%c18_114, %c0_115, %c0_116] : memref<27x4x8xf32, #tpu.memory_space<vmem>>, vector<1x4x8xf32>
    %152 = vector.shape_cast %151 : vector<1x4x8xf32> to vector<4x8xf32>
    %cst_117 = arith.constant dense<0.000000e+00> : vector<4x256xf32>
    %153 = tpu.matmul %152, %150, %cst_117 {dimension_numbers = #tpu.dot_dimension_numbers<[1], [0], [0], [1], [0, 0, 1, 1], [], []>} : vector<4x8xf32>, vector<8x256xf32>, vector<4x256xf32> -> vector<4x256xf32>
    %154 = arith.addf %146, %153 : vector<4x256xf32>
    %c64_i32 = arith.constant 64 : i32
    %155 = tpu.dynamic_rotate %1 by %c64_i32 dim 1 : vector<8x256xf32>, i32 -> vector<8x256xf32>
    %c19 = arith.constant 19 : index
    %c0_118 = arith.constant 0 : index
    %c0_119 = arith.constant 0 : index
    %156 = vector.load %arg3[%c19, %c0_118, %c0_119] : memref<27x8x256xf32, #tpu.memory_space<vmem>>, vector<1x8x256xf32>
    %157 = vector.shape_cast %156 : vector<1x8x256xf32> to vector<8x256xf32>
    %158 = arith.mulf %155, %157 : vector<8x256xf32>
    %c19_120 = arith.constant 19 : index
    %c0_121 = arith.constant 0 : index
    %c0_122 = arith.constant 0 : index
    %159 = vector.load %arg2[%c19_120, %c0_121, %c0_122] : memref<27x4x8xf32, #tpu.memory_space<vmem>>, vector<1x4x8xf32>
    %160 = vector.shape_cast %159 : vector<1x4x8xf32> to vector<4x8xf32>
    %cst_123 = arith.constant dense<0.000000e+00> : vector<4x256xf32>
    %161 = tpu.matmul %160, %158, %cst_123 {dimension_numbers = #tpu.dot_dimension_numbers<[1], [0], [0], [1], [0, 0, 1, 1], [], []>} : vector<4x8xf32>, vector<8x256xf32>, vector<4x256xf32> -> vector<4x256xf32>
    %162 = arith.addf %154, %161 : vector<4x256xf32>
    %c60_i32 = arith.constant 60 : i32
    %163 = tpu.dynamic_rotate %1 by %c60_i32 dim 1 : vector<8x256xf32>, i32 -> vector<8x256xf32>
    %c20 = arith.constant 20 : index
    %c0_124 = arith.constant 0 : index
    %c0_125 = arith.constant 0 : index
    %164 = vector.load %arg3[%c20, %c0_124, %c0_125] : memref<27x8x256xf32, #tpu.memory_space<vmem>>, vector<1x8x256xf32>
    %165 = vector.shape_cast %164 : vector<1x8x256xf32> to vector<8x256xf32>
    %166 = arith.mulf %163, %165 : vector<8x256xf32>
    %c20_126 = arith.constant 20 : index
    %c0_127 = arith.constant 0 : index
    %c0_128 = arith.constant 0 : index
    %167 = vector.load %arg2[%c20_126, %c0_127, %c0_128] : memref<27x4x8xf32, #tpu.memory_space<vmem>>, vector<1x4x8xf32>
    %168 = vector.shape_cast %167 : vector<1x4x8xf32> to vector<4x8xf32>
    %cst_129 = arith.constant dense<0.000000e+00> : vector<4x256xf32>
    %169 = tpu.matmul %168, %166, %cst_129 {dimension_numbers = #tpu.dot_dimension_numbers<[1], [0], [0], [1], [0, 0, 1, 1], [], []>} : vector<4x8xf32>, vector<8x256xf32>, vector<4x256xf32> -> vector<4x256xf32>
    %170 = arith.addf %162, %169 : vector<4x256xf32>
    %c4_i32 = arith.constant 4 : i32
    %171 = tpu.dynamic_rotate %1 by %c4_i32 dim 1 : vector<8x256xf32>, i32 -> vector<8x256xf32>
    %c21 = arith.constant 21 : index
    %c0_130 = arith.constant 0 : index
    %c0_131 = arith.constant 0 : index
    %172 = vector.load %arg3[%c21, %c0_130, %c0_131] : memref<27x8x256xf32, #tpu.memory_space<vmem>>, vector<1x8x256xf32>
    %173 = vector.shape_cast %172 : vector<1x8x256xf32> to vector<8x256xf32>
    %174 = arith.mulf %171, %173 : vector<8x256xf32>
    %c21_132 = arith.constant 21 : index
    %c0_133 = arith.constant 0 : index
    %c0_134 = arith.constant 0 : index
    %175 = vector.load %arg2[%c21_132, %c0_133, %c0_134] : memref<27x4x8xf32, #tpu.memory_space<vmem>>, vector<1x4x8xf32>
    %176 = vector.shape_cast %175 : vector<1x4x8xf32> to vector<4x8xf32>
    %cst_135 = arith.constant dense<0.000000e+00> : vector<4x256xf32>
    %177 = tpu.matmul %176, %174, %cst_135 {dimension_numbers = #tpu.dot_dimension_numbers<[1], [0], [0], [1], [0, 0, 1, 1], [], []>} : vector<4x8xf32>, vector<8x256xf32>, vector<4x256xf32> -> vector<4x256xf32>
    %178 = arith.addf %170, %177 : vector<4x256xf32>
    %c22 = arith.constant 22 : index
    %c0_136 = arith.constant 0 : index
    %c0_137 = arith.constant 0 : index
    %179 = vector.load %arg3[%c22, %c0_136, %c0_137] : memref<27x8x256xf32, #tpu.memory_space<vmem>>, vector<1x8x256xf32>
    %180 = vector.shape_cast %179 : vector<1x8x256xf32> to vector<8x256xf32>
    %181 = arith.mulf %1, %180 : vector<8x256xf32>
    %c22_138 = arith.constant 22 : index
    %c0_139 = arith.constant 0 : index
    %c0_140 = arith.constant 0 : index
    %182 = vector.load %arg2[%c22_138, %c0_139, %c0_140] : memref<27x4x8xf32, #tpu.memory_space<vmem>>, vector<1x4x8xf32>
    %183 = vector.shape_cast %182 : vector<1x4x8xf32> to vector<4x8xf32>
    %cst_141 = arith.constant dense<0.000000e+00> : vector<4x256xf32>
    %184 = tpu.matmul %183, %181, %cst_141 {dimension_numbers = #tpu.dot_dimension_numbers<[1], [0], [0], [1], [0, 0, 1, 1], [], []>} : vector<4x8xf32>, vector<8x256xf32>, vector<4x256xf32> -> vector<4x256xf32>
    %185 = arith.addf %178, %184 : vector<4x256xf32>
    %c252_i32 = arith.constant 252 : i32
    %186 = tpu.dynamic_rotate %1 by %c252_i32 dim 1 : vector<8x256xf32>, i32 -> vector<8x256xf32>
    %c23 = arith.constant 23 : index
    %c0_142 = arith.constant 0 : index
    %c0_143 = arith.constant 0 : index
    %187 = vector.load %arg3[%c23, %c0_142, %c0_143] : memref<27x8x256xf32, #tpu.memory_space<vmem>>, vector<1x8x256xf32>
    %188 = vector.shape_cast %187 : vector<1x8x256xf32> to vector<8x256xf32>
    %189 = arith.mulf %186, %188 : vector<8x256xf32>
    %c23_144 = arith.constant 23 : index
    %c0_145 = arith.constant 0 : index
    %c0_146 = arith.constant 0 : index
    %190 = vector.load %arg2[%c23_144, %c0_145, %c0_146] : memref<27x4x8xf32, #tpu.memory_space<vmem>>, vector<1x4x8xf32>
    %191 = vector.shape_cast %190 : vector<1x4x8xf32> to vector<4x8xf32>
    %cst_147 = arith.constant dense<0.000000e+00> : vector<4x256xf32>
    %192 = tpu.matmul %191, %189, %cst_147 {dimension_numbers = #tpu.dot_dimension_numbers<[1], [0], [0], [1], [0, 0, 1, 1], [], []>} : vector<4x8xf32>, vector<8x256xf32>, vector<4x256xf32> -> vector<4x256xf32>
    %193 = arith.addf %185, %192 : vector<4x256xf32>
    %c196_i32 = arith.constant 196 : i32
    %194 = tpu.dynamic_rotate %1 by %c196_i32 dim 1 : vector<8x256xf32>, i32 -> vector<8x256xf32>
    %c24 = arith.constant 24 : index
    %c0_148 = arith.constant 0 : index
    %c0_149 = arith.constant 0 : index
    %195 = vector.load %arg3[%c24, %c0_148, %c0_149] : memref<27x8x256xf32, #tpu.memory_space<vmem>>, vector<1x8x256xf32>
    %196 = vector.shape_cast %195 : vector<1x8x256xf32> to vector<8x256xf32>
    %197 = arith.mulf %194, %196 : vector<8x256xf32>
    %c24_150 = arith.constant 24 : index
    %c0_151 = arith.constant 0 : index
    %c0_152 = arith.constant 0 : index
    %198 = vector.load %arg2[%c24_150, %c0_151, %c0_152] : memref<27x4x8xf32, #tpu.memory_space<vmem>>, vector<1x4x8xf32>
    %199 = vector.shape_cast %198 : vector<1x4x8xf32> to vector<4x8xf32>
    %cst_153 = arith.constant dense<0.000000e+00> : vector<4x256xf32>
    %200 = tpu.matmul %199, %197, %cst_153 {dimension_numbers = #tpu.dot_dimension_numbers<[1], [0], [0], [1], [0, 0, 1, 1], [], []>} : vector<4x8xf32>, vector<8x256xf32>, vector<4x256xf32> -> vector<4x256xf32>
    %201 = arith.addf %193, %200 : vector<4x256xf32>
    %c192_i32 = arith.constant 192 : i32
    %202 = tpu.dynamic_rotate %1 by %c192_i32 dim 1 : vector<8x256xf32>, i32 -> vector<8x256xf32>
    %c25 = arith.constant 25 : index
    %c0_154 = arith.constant 0 : index
    %c0_155 = arith.constant 0 : index
    %203 = vector.load %arg3[%c25, %c0_154, %c0_155] : memref<27x8x256xf32, #tpu.memory_space<vmem>>, vector<1x8x256xf32>
    %204 = vector.shape_cast %203 : vector<1x8x256xf32> to vector<8x256xf32>
    %205 = arith.mulf %202, %204 : vector<8x256xf32>
    %c25_156 = arith.constant 25 : index
    %c0_157 = arith.constant 0 : index
    %c0_158 = arith.constant 0 : index
    %206 = vector.load %arg2[%c25_156, %c0_157, %c0_158] : memref<27x4x8xf32, #tpu.memory_space<vmem>>, vector<1x4x8xf32>
    %207 = vector.shape_cast %206 : vector<1x4x8xf32> to vector<4x8xf32>
    %cst_159 = arith.constant dense<0.000000e+00> : vector<4x256xf32>
    %208 = tpu.matmul %207, %205, %cst_159 {dimension_numbers = #tpu.dot_dimension_numbers<[1], [0], [0], [1], [0, 0, 1, 1], [], []>} : vector<4x8xf32>, vector<8x256xf32>, vector<4x256xf32> -> vector<4x256xf32>
    %209 = arith.addf %201, %208 : vector<4x256xf32>
    %c188_i32 = arith.constant 188 : i32
    %210 = tpu.dynamic_rotate %1 by %c188_i32 dim 1 : vector<8x256xf32>, i32 -> vector<8x256xf32>
    %c26 = arith.constant 26 : index
    %c0_160 = arith.constant 0 : index
    %c0_161 = arith.constant 0 : index
    %211 = vector.load %arg3[%c26, %c0_160, %c0_161] : memref<27x8x256xf32, #tpu.memory_space<vmem>>, vector<1x8x256xf32>
    %212 = vector.shape_cast %211 : vector<1x8x256xf32> to vector<8x256xf32>
    %213 = arith.mulf %210, %212 : vector<8x256xf32>
    %c26_162 = arith.constant 26 : index
    %c0_163 = arith.constant 0 : index
    %c0_164 = arith.constant 0 : index
    %214 = vector.load %arg2[%c26_162, %c0_163, %c0_164] : memref<27x4x8xf32, #tpu.memory_space<vmem>>, vector<1x4x8xf32>
    %215 = vector.shape_cast %214 : vector<1x4x8xf32> to vector<4x8xf32>
    %cst_165 = arith.constant dense<0.000000e+00> : vector<4x256xf32>
    %216 = tpu.matmul %215, %213, %cst_165 {dimension_numbers = #tpu.dot_dimension_numbers<[1], [0], [0], [1], [0, 0, 1, 1], [], []>} : vector<4x8xf32>, vector<8x256xf32>, vector<4x256xf32> -> vector<4x256xf32>
    %217 = arith.addf %209, %216 : vector<4x256xf32>
    %c0_166 = arith.constant 0 : index
    %c0_167 = arith.constant 0 : index
    %c0_168 = arith.constant 0 : index
    %218 = vector.load %arg5[%c0_166, %c0_167, %c0_168] : memref<1x4x256xf32, #tpu.memory_space<vmem>>, vector<1x4x256xf32>
    %219 = vector.shape_cast %218 : vector<1x4x256xf32> to vector<4x256xf32>
    %220 = vector.shape_cast %217 : vector<4x256xf32> to vector<1x4x256xf32>
    tpu.vector_store %arg5[%c0_166, %c0_167, %c0_168], %220 {strides = array<i32>} : memref<1x4x256xf32, #tpu.memory_space<vmem>>, vector<1x4x256xf32>,
    return
  }
  func.func @transform_0(%arg0: i32) -> (i32, i32, i32) {
    %c0_i32 = arith.constant 0 : i32
    %c0_i32_0 = arith.constant 0 : i32
    %c0_i32_1 = arith.constant 0 : i32
    return %arg0, %c0_i32, %c0_i32_0 : i32, i32, i32
  }
  func.func @transform_1(%arg0: i32) -> (i32, i32, i32) {
    %c0_i32 = arith.constant 0 : i32
    %c0_i32_0 = arith.constant 0 : i32
    %c0_i32_1 = arith.constant 0 : i32
    %c0_i32_2 = arith.constant 0 : i32
    return %c0_i32, %c0_i32_0, %c0_i32_1 : i32, i32, i32
  }
  func.func @transform_2(%arg0: i32) -> (i32, i32, i32) {
    %c0_i32 = arith.constant 0 : i32
    %c0_i32_0 = arith.constant 0 : i32
    %c0_i32_1 = arith.constant 0 : i32
    %c0_i32_2 = arith.constant 0 : i32
    return %c0_i32, %c0_i32_0, %c0_i32_1 : i32, i32, i32
  }
  func.func @transform_3(%arg0: i32) -> (i32, i32) {
    %c0_i32 = arith.constant 0 : i32
    %c0_i32_0 = arith.constant 0 : i32
    %c0_i32_1 = arith.constant 0 : i32
    return %c0_i32, %c0_i32_0 : i32, i32
  }
  func.func @transform_4(%arg0: i32) -> (i32, i32, i32) {
    %c0_i32 = arith.constant 0 : i32
    %c0_i32_0 = arith.constant 0 : i32
    %c0_i32_1 = arith.constant 0 : i32
    return %arg0, %c0_i32, %c0_i32_0 : i32, i32, i32
  }
}

</mosaic_0001>

<bundles_post_ra>
// kernel: tpu_custom_call.1
= control target key start
LH: loop header
LB: loop body
LE: loop exit
PB: predicated region body
PF: predicated region fallthrough
CT: control target
= control target key end

     0   :  { %9 = vsyncpa [#allocation3], 0  ;;  %s2523_s0 = inlined_call_operand.vmem [shape: f32[2,8,256], index: 0, kind: input, shape index: {}]   ;;  %s2524_s1 = inlined_call_operand.vmem [shape: f32[27,4,8], index: 1, kind: input, shape index: {}]   ;;  %s2525_s2 = inlined_call_operand.hbm [shape: f32[27,8,256], index: 2, kind: input, shape index: {}]   ;;  %s2526_s3 = inlined_call_operand.vmem [shape: f32[4,1], index: 3, kind: input, shape index: {}]   ;;  %s2527_s4 = inlined_call_operand.hbm [shape: f32[2,4,256], index: 4, kind: output, shape index: {}]  }
   0x1   :  { %10 = vsyncpa [#allocation4], 0 }
   0x2   :  { %12 = vsyncpa [#allocation4 + $0x1], 0  ;;  %s2187_s15 = smov 0   ;;  %s2189_s16 = smov 0  }
   0x3   :  { %s2191_s17 = smov 0   ;;  %s2193_s18 = smov 0  }
   0x4 LB: > { %s2208_s19 = sadd.s32 4294967295, %s2135_s18   ;;  %s1868_s20 = sadd.s32 4294967294, %s2135_s18   ;;  %s2135_s18 = sphi %s2193_s18, %s2533_s18   ;;  %s2131_s17 = sphi %s2191_s17, %s2532_s17   ;;  %s2127_s16 = sphi %s2189_s16, %s2531_s16   ;;  %s2123_s15 = sphi %s2187_s15, %s2530_s15  }
   0x5   : > { %s2212_s21 = sadd.s32 1, %s2135_s18   ;;  %s114_s22 = sadd.s32 1, %s2131_s17 }
   0x6   : > { %s111_s23 = ssub.s32 %s2135_s18, %s2212_s21  ;;  %p124_p0 = scmp.ne.s32.totalorder %s2131_s17, %s2127_s16 }
   0x7   : > { %p112_p1 = scmp.eq.s32.totalorder %s111_s23, 0  ;;  %p125_p2 = scmp.eq.s32.totalorder %s2208_s19, 1 }
   0x8   : > { %p130_p3 = scmp.ne.s32.totalorder %s2127_s16, %s2123_s15  ;;  %p131_p4 = scmp.eq.s32.totalorder %s1868_s20, 1 }
   0x9   : > { %s2223_s24 = scalar_select %p112_p1, %s2131_s17, %s114_s22  }
   0xa   : > { %p2225_p5 = por %p125_p2, %p124_p0  ;;  %p2229_p6 = por %p131_p4, %p130_p3 }
   0xb   : > { %p1869_p7 = scmp.ge.s32.totalorder %s2135_s18, 1  ;;  %p138_p8 = scmp.lt.s32.totalorder %s2135_s18, 3 }
   0xc   : > { %p1978_p9 = scmp.eq.s32.totalorder %s2208_s19, 0  ;;  %s152_s29 = sshll.u32 %s2525_s2, 4  ;;  %s153_s29 = int_to_ptr.hbm [resolvable:$true] %s152_s29 }
   0xd   : > { %p139_p10 = pnand %p1869_p7, %p138_p8  ;;  %s2137_s30 = smov [#allocation2]  }
   0xe   : > { %s154_s5 = sshll.u32 %s2137_s30, 4  ;;  %s2138_s6 = smov 256   ;;  %s155_s5 = int_to_ptr.vmem [resolvable:$true] %s154_s5 }
   0xf   : > { %p1970_p11 = pneg %p139_p10  ;;  %s2139_s7 = smov 16  }
  0x10   : > { %181 = sbr.rel (%p139_p10) target bundleno = 410 (0x19a), region = 36 }
  0x11   : > { %p1971_p12 = pnand %p1978_p9, %p1970_p11 }
  0x13   : > { %1973 = dma.hbm_to_vmem [thread:$0]  (!%p1971_p12), %s153_s29, 6912, %s155_s5, [#allocation3], %s2138_s6, %s2138_s6, %s2139_s7  }
  0x15   : > { %2114 = dma.done.wait (%p1978_p9), [#allocation3], 6912  }
  0x16   : > { %2116 = vsyncadd (%p1978_p9), [#allocation3], 4294960384  ;;  %p208_p13 = scmp.lt.s32.totalorder %s2208_s19, 1  ;;  %s2140_s13 = smov 16   ;;  %v225_v5 = vlaneseq  ;;  %v348_v12 = vld [vmem:[#allocation2 + $0x20] sm:$0xff]  ;;  %v349_v13 = vld [vmem:[#allocation2 + $0x28] sm:$0xff] }
  0x17   : > { %s2141_s14 = smov 17   ;;  %s2142_s20 = smov 15   ;;  %v230_v14 = vld [vmem:[#allocation2] sm:$0xff]  ;;  %v231_v15 = vld [vmem:[#allocation2 + $0x8] sm:$0xff]  ;;  %v289_v16 = vld [vmem:[#allocation2 + $0x10] sm:$0xff]  ;;  %vm235_vm3 = vcmask 64512  }
  0x18   : > { %s209_s8 = scalar_select %p208_p13, %s2208_s19, 1  ;;  %v2298_v6 = vand.u32 127, %v225_v5  ;;  %v290_v17 = vld [vmem:[#allocation2 + $0x18] sm:$0xff]  ;;  %v460_v30 = vld [vmem:[#allocation2 + $0x48] sm:$0xff]  ;;  %v459_v31 = vld [vmem:[#allocation2 + $0x40] sm:$0xff]  ;;  %v2161_v46 = vmov 0  }
  0x19   : > { %s2143_s22 = smov 1   ;;  %s2144_s23 = smov 127   ;;  %v1879_v33 = vld [vmem:[%s2524_s1 + $0x4] sm:$0xf]  ;;  %v234_v34 = vld [vmem:[%s2524_s1] sm:$0xf]  ;;  %2038 = vset.pattern.permute.xlu0 %v2161_v46 }
  0x1a   : > { %s1962_s9 = sshll.u32 %s209_s8, 4  ;;  %s2145_s27 = smov 113   ;;  %vm344_vm0 = vcmp.lt.s32.totalorder %v2298_v6, 15  ;;  %vm227_vm1 = vcmp.lt.s32.totalorder %v2298_v6, 17  ;;  %vm285_vm2 = vcmp.lt.s32.totalorder %v2298_v6, 16  ;;  %vm403_vm4 = vcmp.lt.s32.totalorder %v2298_v6, 1 }
  0x1b   : > { %s212_s12 = scalar_lea.vmem %s2523_s0, %s1962_s9  ;;  %s2146_s28 = smov 112   ;;  %v407_v37 = vld [vmem:[#allocation2 + $0x30] sm:$0xff]  ;;  %v408_v38 = vld [vmem:[#allocation2 + $0x38] sm:$0xff]  ;;  %v215_v41 = vld [vmem:[%s2526_s3] sm:$0xf]  ;;  %vm573_vm5 = vcmp.lt.s32.totalorder %v2298_v6, 113 }
  0x1c   : > { %v2250_v0 = vld [vmem:[%s212_s12] sm:$0xff]  ;;  %v2255_v1 = vld [vmem:[%s212_s12 + $0x8] sm:$0xff]  ;;  %s2147_s29 = smov 111   ;;  %s2148_s30 = smov 34   ;;  %vm514_vm6 = vcmp.lt.s32.totalorder %v2298_v6, 127  ;;  %v518_v52 = vld [vmem:[#allocation2 + $0x50] sm:$0xff] }
  0x1d   : > { %281 = vrot.lane.b32.xlu1 %v2250_v0, %s2140_s13  ;;  %221 = vrot.lane.b32.xlu0 %v2250_v0, %s2141_s14  ;;  %s2149_s5 = smov 32   ;;  %s2150_s6 = smov 30   ;;  %v462_v35 = vmul.f32 %v460_v30, %v2255_v1  ;;  %v461_v36 = vmul.f32 %v459_v31, %v2250_v0  ;;  %v1882_v47 = vld [vmem:[%s2524_s1 + $0x8] sm:$0xf]  ;;  %v1885_v48 = vld [vmem:[%s2524_s1 + $0xc] sm:$0xf] }
  0x1e   : > { %340 = vrot.lane.b32.xlu2 %v2250_v0, %s2142_s20  ;;  %s2151_s7 = smov 2   ;;  %s2152_s8 = smov 126   ;;  %v577_v50 = vld [vmem:[#allocation2 + $0x60] sm:$0xff]  ;;  %v578_v51 = vld [vmem:[#allocation2 + $0x68] sm:$0xff]  ;;  %v519_v53 = vld [vmem:[#allocation2 + $0x58] sm:$0xff]  ;;  %vm632_vm7 = vcmp.lt.s32.totalorder %v2298_v6, 112 }
  0x1f   : > { %s2153_s9 = smov 98   ;;  %s2154_s10 = smov 96   ;;  %v637_v5 = vld [vmem:[#allocation2 + $0x78] sm:$0xff]  ;;  %vm750_vm8 = vcmp.lt.s32.totalorder %v2298_v6, 34  ;;  %vm691_vm9 = vcmp.lt.s32.totalorder %v2298_v6, 111  ;;  %vm809_vm10 = vcmp.lt.s32.totalorder %v2298_v6, 32 }
  0x20   : > { %s2155_s11 = smov 94   ;;  %s2156_s12 = smov 68   ;;  %v1900_v31 = vld [vmem:[%s2524_s1 + $0x20] sm:$0xf]  ;;  %vm927_vm11 = vcmp.lt.s32.totalorder %v2298_v6, 2  ;;  %vm868_vm12 = vcmp.lt.s32.totalorder %v2298_v6, 30 }
  0x21   : > { %v873_v46 = vld [vmem:[#allocation2 + $0xb8] sm:$0xff]  ;;  %vm1038_vm13 = vcmp.lt.s32.totalorder %v2298_v6, 126  ;;  %vm1156_vm14 = vcmp.lt.s32.totalorder %v2298_v6, 96  ;;  %vm1097_vm15 = vcmp.lt.s32.totalorder %v2298_v6, 98 }
  0x25   : > { %283 = vrot.lane.b32.xlu1 %v2255_v1, %s2140_s13  ;;  %223 = vrot.lane.b32.xlu0 %v2255_v1, %s2141_s14  ;;  %s2157_s13 = smov 64   ;;  %s2158_s14 = smov 60  }
  0x26   : > { %342 = vrot.lane.b32.xlu2 %v2255_v1, %s2142_s20  ;;  %s2159_s20 = smov 4  }
  0x2d   : > { %401 = vrot.lane.b32.xlu1 %v2255_v1, %s2143_s22  ;;  %399 = vrot.lane.b32.xlu0 %v2250_v0, %s2143_s22  ;;  %s2160_s22 = smov 124  }
  0x2e   : > { %510 = vrot.lane.b32.xlu2 %v2250_v0, %s2144_s23 }
  0x35   : > { %569 = vrot.lane.b32.xlu1 %v2250_v0, %s2145_s27  ;;  %512 = vrot.lane.b32.xlu0 %v2255_v1, %s2144_s23 }
  0x36   : > { %571 = vrot.lane.b32.xlu2 %v2255_v1, %s2145_s27  ;;  %s2089_s27 = scalar_lea.hbm %s2527_s4, 16 }
  0x3d   : > { %630 = vrot.lane.b32.xlu1 %v2255_v1, %s2146_s28  ;;  %628 = vrot.lane.b32.xlu0 %v2250_v0, %s2146_s28 }
  0x3e   : > { %687 = vrot.lane.b32.xlu2 %v2250_v0, %s2147_s29 }
  0x45   : > { %746 = vrot.lane.b32.xlu1 %v2250_v0, %s2148_s30  ;;  %689 = vrot.lane.b32.xlu0 %v2255_v1, %s2147_s29 }
  0x46   : > { %748 = vrot.lane.b32.xlu2 %v2255_v1, %s2148_s30 }
  0x4d   : > { %807 = vrot.lane.b32.xlu1 %v2255_v1, %s2149_s5  ;;  %805 = vrot.lane.b32.xlu0 %v2250_v0, %s2149_s5  ;;  %s205_s5 = sand.u32 1, %s2127_s16  }
  0x4e   : > { %864 = vrot.lane.b32.xlu2 %v2250_v0, %s2150_s6 }
  0x55   : > { %923 = vrot.lane.b32.xlu1 %v2250_v0, %s2151_s7  ;;  %866 = vrot.lane.b32.xlu0 %v2255_v1, %s2150_s6  ;;  %s1874_s6 = sshll.u32 %s205_s5, 3 }
  0x56   : > { %925 = vrot.lane.b32.xlu2 %v2255_v1, %s2151_s7  ;;  %s1963_s7 = sshll.u32 %s2208_s19, 3  ;;  %s1781_s19 = scalar_lea.sflag [#allocation4], %s205_s5 }
  0x5d   : > { %1036 = vrot.lane.b32.xlu1 %v2255_v1, %s2152_s8  ;;  %1034 = vrot.lane.b32.xlu0 %v2250_v0, %s2152_s8 }
  0x5e   : > { %1093 = vrot.lane.b32.xlu2 %v2250_v0, %s2153_s9 }
  0x65   : > { %1152 = vrot.lane.b32.xlu1 %v2250_v0, %s2154_s10  ;;  %1095 = vrot.lane.b32.xlu0 %v2255_v1, %s2153_s9 }
  0x66   : > { %1154 = vrot.lane.b32.xlu2 %v2255_v1, %s2154_s10  ;;  %s1792_s10 = scalar_lea.hbm %s2527_s4, %s1963_s7 }
  0x6d   : > { %1213 = vrot.lane.b32.xlu1 %v2255_v1, %s2155_s11  ;;  %1211 = vrot.lane.b32.xlu0 %v2250_v0, %s2155_s11  ;;  %s207_s11 = scalar_lea.vmem [#allocation5], %s1874_s6 }
  0x6e   : > { %1270 = vrot.lane.b32.xlu2 %v2250_v0, %s2156_s12 }
  0x75   : > { %1329 = vrot.lane.b32.xlu1 %v2250_v0, %s2157_s13  ;;  %1272 = vrot.lane.b32.xlu0 %v2255_v1, %s2156_s12  ;;  %s1794_s12 = sshll.u32 %s207_s11, 4  ;;  %s1795_s12 = int_to_ptr.vmem [resolvable:$true] %s1794_s12 }
  0x76   : > { %1331 = vrot.lane.b32.xlu2 %v2255_v1, %s2157_s13  ;;  %s1796_s13 = sshll.u32 %s1792_s10, 4  ;;  %s1797_s13 = int_to_ptr.hbm [resolvable:$true] %s1796_s13 }
  0x78   : > { %v341_v2 = vpop.permute.xlu2 %340 }
  0x7d   : > { %1390 = vrot.lane.b32.xlu1 %v2255_v1, %s2158_s14  ;;  %1388 = vrot.lane.b32.xlu0 %v2250_v0, %s2158_s14  ;;  %s2083_s14 = sshra.s32 %s1797_s13, 4  ;;  %s2084_s14 = int_to_ptr.hbm [resolvable:$true] %s2083_s14 }
  0x7e   : > { %1447 = vrot.lane.b32.xlu2 %v2250_v0, %s2159_s20  ;;  %p2090_p3 = scmp.lt.s32.totalorder %s2084_s14, %s2527_s4 }
  0x80   : > { %v343_v3 = vpop.permute.xlu2 %342 }
  0x81   : > { %v345_v10 = vsel %vm344_vm0, %v341_v2, %v343_v3  ;;  %v346_v11 = vsel %vm344_vm0, %v343_v3, %v341_v2  ;;  %v1888_v2 = vld [vmem:[%s2524_s1 + $0x10] sm:$0xf]  ;;  %v1891_v3 = vld [vmem:[%s2524_s1 + $0x14] sm:$0xf]  ;;  %vm1215_vm0 = vcmp.lt.s32.totalorder %v2298_v6, 94 }
  0x82   : > { %v350_v20 = vmul.f32 %v348_v12, %v346_v11  ;;  %v351_v21 = vmul.f32 %v349_v13, %v345_v10 }
  0x85   : > { %1449 = vrot.lane.b32.xlu0 %v2255_v1, %s2159_s20  ;;  %1558 = vrot.lane.b32.xlu1 %v2250_v0, %s2160_s22  ;;  %s2085_s20 = scalar_lea.hbm %s2084_s14, 8 }
  0x86   : > { %1560 = vrot.lane.b32.xlu2 %v2255_v1, %s2160_s22  ;;  %p2086_p0 = scmp.ne.s32.totalorder %s2084_s14, %s2085_s20  ;;  %p2091_p4 = scmp.lt.s32.totalorder %s2089_s27, %s2085_s20 }
  0x88   : > { %v2296_v4 = vpop.permute.xlu2 %510  ;;  %p2087_p1 = pnand %p2086_p0, %p2225_p5  ;;  %p2092_p7 = por %p2091_p4, %p2090_p3 }
  0x8a   : > { %p2088_p2 = pneg %p2087_p1 }
  0x8c   : > { %p2093_p8 = pnand %p2092_p7, %p2088_p2 }
  0x8d   : > { %218 = vperm.xlu0 %2038, %v215_v41  }
  0x8f   : > { %v282_v7 = vpop.permute.xlu1 %281  ;;  %v222_v8 = vpop.permute.xlu0 %221 }
  0x90   : > { %v2300_v9 = vpop.permute.xlu2 %571 }
  0x97   : > { %v284_v18 = vpop.permute.xlu1 %283  ;;  %v224_v19 = vpop.permute.xlu0 %223 }
  0x98   : > { %v229_v22 = vsel %vm227_vm1, %v224_v19, %v222_v8  ;;  %v228_v23 = vsel %vm227_vm1, %v222_v8, %v224_v19  ;;  %v287_v24 = vsel %vm285_vm2, %v284_v18, %v282_v7  ;;  %v286_v25 = vsel %vm285_vm2, %v282_v7, %v284_v18  ;;  %v2305_v32 = vpop.permute.xlu2 %687  ;;  %v695_v18 = vld [vmem:[#allocation2 + $0x80] sm:$0xff]  ;;  %v696_v19 = vld [vmem:[#allocation2 + $0x88] sm:$0xff] }
  0x99   : > { %v232_v26 = vmul.f32 %v230_v14, %v229_v22  ;;  %v233_v27 = vmul.f32 %v231_v15, %v228_v23  ;;  %v291_v28 = vmul.f32 %v289_v16, %v287_v24  ;;  %v292_v29 = vmul.f32 %v290_v17, %v286_v25  ;;  %v1894_v14 = vld [vmem:[%s2524_s1 + $0x18] sm:$0xf]  ;;  %v1897_v15 = vld [vmem:[%s2524_s1 + $0x1c] sm:$0xf]  ;;  %v754_v16 = vld [vmem:[#allocation2 + $0x90] sm:$0xff] }
  0x9a   : > { %v755_v17 = vld [vmem:[#allocation2 + $0x98] sm:$0xff]  ;;  %vm1333_vm1 = vcmp.lt.s32.totalorder %v2298_v6, 64  ;;  %vm1274_vm2 = vcmp.lt.s32.totalorder %v2298_v6, 68 }
  0x9b   : > { %254 = vmatpush.msra.mxu0 %v232_v26  ;;  %274 = vmatpush.msra.mxu1 %v233_v27 }
  0x9c   : > { %313 = vmatpush.msra.mxu2 %v291_v28  ;;  %333 = vmatpush.msra.mxu3 %v292_v29 }
  0x9d   : > { %372 = vmatpush.msrb.mxu0 %v350_v20  ;;  %392 = vmatpush.msrb.mxu1 %v351_v21 }
  0x9e   : > { %1881 = vmatmul.msk.f32.vlgmr.msra.gmra.mxu3 %vm235_vm3, %v1879_v33  ;;  %1878 = vmatmul.msk.f32.vlgmr.msra.gmra.mxu1 %vm235_vm3, %v234_v34 }
  0x9f   : > { %v402_v39 = vpop.permute.xlu1 %401  ;;  %v400_v40 = vpop.permute.xlu0 %399  ;;  %1877 = vmatmul.msk.f32.vlgmr.msra.gmra.mxu0 %vm235_vm3, %v234_v34  ;;  %1880 = vmatmul.msk.f32.vlgmr.msra.gmra.mxu2 %vm235_vm3, %v1879_v33  ;;  %v1903_v33 = vld [vmem:[%s2524_s1 + $0x24] sm:$0xf]  ;;  %v814_v34 = vld [vmem:[#allocation2 + $0xa8] sm:$0xff] }
  0xa0   : > { %v404_v42 = vsel %vm403_vm4, %v400_v40, %v402_v39  ;;  %v405_v43 = vsel %vm403_vm4, %v402_v39, %v400_v40  ;;  %503 = vmatpush.msra.mxu1 %v462_v35  ;;  %483 = vmatpush.msra.mxu0 %v461_v36  ;;  %v749_v49 = vpop.permute.xlu2 %748  ;;  %vm1392_vm4 = vcmp.lt.s32.totalorder %v2298_v6, 60 }
  0xa1   : > { %v409_v44 = vmul.f32 %v407_v37, %v405_v43  ;;  %v410_v45 = vmul.f32 %v408_v38, %v404_v42  ;;  %v1906_v42 = vld [vmem:[%s2524_s1 + $0x28] sm:$0xf]  ;;  %v931_v43 = vld [vmem:[#allocation2 + $0xc0] sm:$0xff] }
  0xa3   : > { %431 = vmatpush.msrb.mxu2 %v409_v44  ;;  %451 = vmatpush.msrb.mxu3 %v410_v45  ;;  %v932_v44 = vld [vmem:[#allocation2 + $0xc8] sm:$0xff]  ;;  %v872_v45 = vld [vmem:[#allocation2 + $0xb0] sm:$0xff] }
  0xa6   : > { %1884 = vmatmul.msk.f32.vlgmr.msrb.gmra.mxu1 %vm235_vm3, %v1882_v47  ;;  %1887 = vmatmul.msk.f32.vlgmr.msrb.gmra.mxu3 %vm235_vm3, %v1885_v48 }
  0xa7   : > { %v570_v54 = vpop.permute.xlu1 %569  ;;  %v513_v55 = vpop.permute.xlu0 %512  ;;  %1883 = vmatmul.msk.f32.vlgmr.msrb.gmra.mxu0 %vm235_vm3, %v1882_v47  ;;  %1886 = vmatmul.msk.f32.vlgmr.msrb.gmra.mxu2 %vm235_vm3, %v1885_v48 }
  0xa8   : > { %v574_v56 = vsel %vm573_vm5, %v570_v54, %v2300_v9  ;;  %v575_v57 = vsel %vm573_vm5, %v2300_v9, %v570_v54  ;;  %v515_v58 = vsel %vm514_vm6, %v2296_v4, %v513_v55  ;;  %v516_v59 = vsel %vm514_vm6, %v513_v55, %v2296_v4  ;;  %v636_v4 = vld [vmem:[#allocation2 + $0x70] sm:$0xff]  ;;  %v2348_v7 = vpop.permute.xlu2 %864 }
  0xa9   : > { %v579_v60 = vmul.f32 %v577_v50, %v574_v56  ;;  %v580_v61 = vmul.f32 %v578_v51, %v575_v57  ;;  %v520_v62 = vmul.f32 %v518_v52, %v515_v58  ;;  %v521_v63 = vmul.f32 %v519_v53, %v516_v59  ;;  %v984_v50 = vld [vmem:[#allocation2 + $0xd8] sm:$0xff]  ;;  %v1909_v59 = vld [vmem:[%s2524_s1 + $0x2c] sm:$0xf] }
  0xaa   : > { %vm1451_vm5 = vcmp.lt.s32.totalorder %v2298_v6, 4  ;;  %vm1562_vm6 = vcmp.lt.s32.totalorder %v2298_v6, 124  ;;  %v1723_v6 = vld [vmem:[#allocation2 + $0x1a8] sm:$0xff] }
  0xab   : > { %542 = vmatpush.msra.mxu2 %v520_v62  ;;  %562 = vmatpush.msra.mxu3 %v521_v63  ;;  %v1912_v62 = vld [vmem:[%s2524_s1 + $0x30] sm:$0xf] }
  0xac   : > { %601 = vmatpush.msrb.mxu0 %v579_v60  ;;  %621 = vmatpush.msrb.mxu1 %v580_v61  ;;  %v986_v61 = vmul.f32 %v984_v50, %v2255_v1 }
  0xae   : > { %1890 = vmatmul.msk.f32.vlgmr.msra.gmra.mxu1 %vm235_vm3, %v1888_v2  ;;  %1893 = vmatmul.msk.f32.vlgmr.msra.gmra.mxu3 %vm235_vm3, %v1891_v3 }
  0xaf   : > { %v631_v8 = vpop.permute.xlu1 %630  ;;  %v629_v9 = vpop.permute.xlu0 %628  ;;  %1889 = vmatmul.msk.f32.vlgmr.msra.gmra.mxu0 %vm235_vm3, %v1888_v2  ;;  %1892 = vmatmul.msk.f32.vlgmr.msra.gmra.mxu2 %vm235_vm3, %v1891_v3  ;;  %v1042_v2 = vld [vmem:[#allocation2 + $0xe0] sm:$0xff]  ;;  %v1043_v3 = vld [vmem:[#allocation2 + $0xe8] sm:$0xff] }
  0xb0   : > { %v633_v10 = vsel %vm632_vm7, %v629_v9, %v631_v8  ;;  %v634_v11 = vsel %vm632_vm7, %v631_v8, %v629_v9  ;;  %v926_v26 = vpop.permute.xlu2 %925 }
  0xb1   : > { %v638_v12 = vmul.f32 %v636_v4, %v633_v10  ;;  %v639_v13 = vmul.f32 %v637_v5, %v634_v11  ;;  %v1915_v11 = vld [vmem:[%s2524_s1 + $0x34] sm:$0xf] }
  0xb3   : > { %660 = vmatpush.msrb.mxu2 %v638_v12  ;;  %680 = vmatpush.msrb.mxu3 %v639_v13  ;;  %v1918_v12 = vld [vmem:[%s2524_s1 + $0x38] sm:$0xf]  ;;  %v1160_v13 = vld [vmem:[#allocation2 + $0x100] sm:$0xff] }
  0xb6   : > { %1896 = vmatmul.msk.f32.vlgmr.msrb.gmra.mxu1 %vm235_vm3, %v1894_v14  ;;  %1899 = vmatmul.msk.f32.vlgmr.msrb.gmra.mxu3 %vm235_vm3, %v1897_v15 }
  0xb7   : > { %v747_v20 = vpop.permute.xlu1 %746  ;;  %v690_v21 = vpop.permute.xlu0 %689  ;;  %1895 = vmatmul.msk.f32.vlgmr.msrb.gmra.mxu0 %vm235_vm3, %v1894_v14  ;;  %1898 = vmatmul.msk.f32.vlgmr.msrb.gmra.mxu2 %vm235_vm3, %v1897_v15  ;;  %v1161_v14 = vld [vmem:[#allocation2 + $0x108] sm:$0xff]  ;;  %v1101_v15 = vld [vmem:[#allocation2 + $0xf0] sm:$0xff] }
  0xb8   : > { %v751_v22 = vsel %vm750_vm8, %v747_v20, %v749_v49  ;;  %v752_v23 = vsel %vm750_vm8, %v749_v49, %v747_v20  ;;  %v692_v24 = vsel %vm691_vm9, %v2305_v32, %v690_v21  ;;  %v693_v25 = vsel %vm691_vm9, %v690_v21, %v2305_v32  ;;  %v813_v32 = vld [vmem:[#allocation2 + $0xa0] sm:$0xff]  ;;  %v2377_v41 = vpop.permute.xlu2 %1093  ;;  %v983_v49 = vld [vmem:[#allocation2 + $0xd0] sm:$0xff] }
  0xb9   : > { %v756_v27 = vmul.f32 %v754_v16, %v752_v23  ;;  %v757_v28 = vmul.f32 %v755_v17, %v751_v22  ;;  %v697_v29 = vmul.f32 %v695_v18, %v692_v24  ;;  %v698_v30 = vmul.f32 %v696_v19, %v693_v25  ;;  %v1102_v16 = vld [vmem:[#allocation2 + $0xf8] sm:$0xff] }
  0xba   : > { %v985_v60 = vmul.f32 %v983_v49, %v2250_v0 }
  0xbb   : > { %719 = vmatpush.msra.mxu0 %v697_v29  ;;  %739 = vmatpush.msra.mxu1 %v698_v30  ;;  %v1924_v29 = vld [vmem:[%s2524_s1 + $0x40] sm:$0xf]  ;;  %v1219_v30 = vld [vmem:[#allocation2 + $0x110] sm:$0xff] }
  0xbc   : > { %798 = vmatpush.msra.mxu3 %v757_v28  ;;  %778 = vmatpush.msra.mxu2 %v756_v27  ;;  %v1921_v28 = vld [vmem:[%s2524_s1 + $0x3c] sm:$0xf] }
  0xbe   : > { %1902 = vmatmul.msk.f32.vlgmr.msra.gmra.mxu1 %vm235_vm3, %v1900_v31  ;;  %1905 = vmatmul.msk.f32.vlgmr.msra.gmra.mxu3 %vm235_vm3, %v1903_v33 }
  0xbf   : > { %v808_v35 = vpop.permute.xlu1 %807  ;;  %v806_v36 = vpop.permute.xlu0 %805  ;;  %1901 = vmatmul.msk.f32.vlgmr.msra.gmra.mxu0 %vm235_vm3, %v1900_v31  ;;  %1904 = vmatmul.msk.f32.vlgmr.msra.gmra.mxu2 %vm235_vm3, %v1903_v33  ;;  %v1220_v31 = vld [vmem:[#allocation2 + $0x118] sm:$0xff] }
  0xc0   : > { %v810_v37 = vsel %vm809_vm10, %v806_v36, %v808_v35  ;;  %v811_v38 = vsel %vm809_vm10, %v808_v35, %v806_v36  ;;  %v1155_v63 = vpop.permute.xlu2 %1154 }
  0xc1   : > { %v815_v39 = vmul.f32 %v813_v32, %v811_v38  ;;  %v816_v40 = vmul.f32 %v814_v34, %v810_v37  ;;  %v1927_v38 = vld [vmem:[%s2524_s1 + $0x44] sm:$0xf] }
  0xc3   : > { %837 = vmatpush.msrb.mxu0 %v815_v39  ;;  %857 = vmatpush.msrb.mxu1 %v816_v40  ;;  %v1337_v40 = vld [vmem:[#allocation2 + $0x130] sm:$0xff] }
  0xc6   : > { %1908 = vmatmul.msk.f32.vlgmr.msrb.gmra.mxu1 %vm235_vm3, %v1906_v42 }
  0xc7   : > { %v924_v47 = vpop.permute.xlu1 %923  ;;  %v867_v48 = vpop.permute.xlu0 %866  ;;  %1907 = vmatmul.msk.f32.vlgmr.msrb.gmra.mxu0 %vm235_vm3, %v1906_v42 }
  0xc8   : > { %v928_v51 = vsel %vm927_vm11, %v924_v47, %v926_v26  ;;  %v929_v52 = vsel %vm927_vm11, %v926_v26, %v924_v47  ;;  %v869_v53 = vsel %vm868_vm12, %v2348_v7, %v867_v48  ;;  %v870_v54 = vsel %vm868_vm12, %v867_v48, %v2348_v7  ;;  %v1271_v17 = vpop.permute.xlu2 %1270 }
  0xc9   : > { %v933_v55 = vmul.f32 %v931_v43, %v929_v52  ;;  %v934_v56 = vmul.f32 %v932_v44, %v928_v51  ;;  %v874_v57 = vmul.f32 %v872_v45, %v870_v54  ;;  %v875_v58 = vmul.f32 %v873_v46, %v869_v53  ;;  %v1278_v43 = vld [vmem:[#allocation2 + $0x120] sm:$0xff]  ;;  %v1279_v44 = vld [vmem:[#allocation2 + $0x128] sm:$0xff] }
  0xca   : > { %v1930_v54 = vld [vmem:[%s2524_s1 + $0x48] sm:$0xf] }
  0xcb   : > { %896 = vmatpush.msrb.mxu2 %v874_v57  ;;  %916 = vmatpush.msrb.mxu3 %v875_v58  ;;  %v1507_v57 = vld [vmem:[#allocation2 + $0x160] sm:$0xff]  ;;  %v1508_v58 = vld [vmem:[#allocation2 + $0x168] sm:$0xff] }
  0xcc   : > { %1910 = vmatmul.msk.f32.vlgmr.msrb.gmra.mxu2 %vm235_vm3, %v1909_v59  ;;  %1911 = vmatmul.msk.f32.vlgmr.msrb.gmra.mxu3 %vm235_vm3, %v1909_v59  ;;  %v1396_v59 = vld [vmem:[#allocation2 + $0x140] sm:$0xff] }
  0xcd   : > { %955 = vmatpush.msra.mxu0 %v933_v55  ;;  %975 = vmatpush.msra.mxu1 %v934_v56  ;;  %v1933_v55 = vld [vmem:[%s2524_s1 + $0x4c] sm:$0xf] }
  0xce   : > { %1007 = vmatpush.msra.mxu2 %v985_v60  ;;  %1027 = vmatpush.msra.mxu3 %v986_v61  ;;  %v1397_v60 = vld [vmem:[#allocation2 + $0x148] sm:$0xff] }
  0xcf   : > { %v1037_v4 = vpop.permute.xlu1 %1036  ;;  %v1035_v5 = vpop.permute.xlu0 %1034  ;;  %1913 = vmatmul.msk.f32.vlgmr.msra.gmra.mxu0 %vm235_vm3, %v1912_v62  ;;  %1914 = vmatmul.msk.f32.vlgmr.msra.gmra.mxu1 %vm235_vm3, %v1912_v62 }
  0xd0   : > { %v1039_v7 = vsel %vm1038_vm13, %v1035_v5, %v1037_v4  ;;  %v1040_v8 = vsel %vm1038_vm13, %v1037_v4, %v1035_v5  ;;  %v1332_v39 = vpop.permute.xlu2 %1331  ;;  %v1510_v4 = vmul.f32 %v1508_v58, %v2255_v1  ;;  %v1618_v5 = vld [vmem:[#allocation2 + $0x180] sm:$0xff]  ;;  %v1455_v1 = vld [vmem:[#allocation2 + $0x150] sm:$0xff] }
  0xd1   : > { %v1044_v9 = vmul.f32 %v1042_v2, %v1039_v7  ;;  %v1045_v10 = vmul.f32 %v1043_v3, %v1040_v8  ;;  %v1509_v3 = vmul.f32 %v1507_v57, %v2250_v0  ;;  %v1619_v7 = vld [vmem:[#allocation2 + $0x188] sm:$0xff] }
  0xd3   : > { %1066 = vmatpush.msrb.mxu0 %v1044_v9  ;;  %1086 = vmatpush.msrb.mxu1 %v1045_v10  ;;  %v1936_v10 = vld [vmem:[%s2524_s1 + $0x50] sm:$0xf] }
  0xd4   : > { %1916 = vmatmul.msk.f32.vlgmr.msra.gmra.mxu2 %vm235_vm3, %v1915_v11  ;;  %1917 = vmatmul.msk.f32.vlgmr.msra.gmra.mxu3 %vm235_vm3, %v1915_v11 }
  0xd7   : > { %v1153_v18 = vpop.permute.xlu1 %1152  ;;  %v1096_v19 = vpop.permute.xlu0 %1095  ;;  %1919 = vmatmul.msk.f32.vlgmr.msrb.gmra.mxu0 %vm235_vm3, %v1918_v12  ;;  %1920 = vmatmul.msk.f32.vlgmr.msrb.gmra.mxu1 %vm235_vm3, %v1918_v12 }
  0xd8   : > { %v1157_v20 = vsel %vm1156_vm14, %v1153_v18, %v1155_v63  ;;  %v1158_v21 = vsel %vm1156_vm14, %v1155_v63, %v1153_v18  ;;  %v1098_v22 = vsel %vm1097_vm15, %v2377_v41, %v1096_v19  ;;  %v1099_v23 = vsel %vm1097_vm15, %v1096_v19, %v2377_v41  ;;  %v1338_v41 = vld [vmem:[#allocation2 + $0x138] sm:$0xff]  ;;  %v1448_v56 = vpop.permute.xlu2 %1447 }
  0xd9   : > { %v1162_v24 = vmul.f32 %v1160_v13, %v1157_v20  ;;  %v1163_v25 = vmul.f32 %v1161_v14, %v1158_v21  ;;  %v1103_v26 = vmul.f32 %v1101_v15, %v1098_v22  ;;  %v1104_v27 = vmul.f32 %v1102_v16, %v1099_v23  ;;  %v1456_v13 = vld [vmem:[#allocation2 + $0x158] sm:$0xff]  ;;  %v1566_v15 = vld [vmem:[#allocation2 + $0x170] sm:$0xff] }
  0xda   : > { %v1567_v16 = vld [vmem:[#allocation2 + $0x178] sm:$0xff] }
  0xdb   : > { %1125 = vmatpush.msrb.mxu2 %v1103_v26  ;;  %1145 = vmatpush.msrb.mxu3 %v1104_v27 }
  0xdc   : > { %1922 = vmatmul.msk.f32.vlgmr.msrb.gmra.mxu2 %vm235_vm3, %v1921_v28  ;;  %1923 = vmatmul.msk.f32.vlgmr.msrb.gmra.mxu3 %vm235_vm3, %v1921_v28  ;;  %v1942_v28 = vld [vmem:[%s2524_s1 + $0x58] sm:$0xf] }
  0xdd   : > { %1184 = vmatpush.msra.mxu0 %v1162_v24  ;;  %1204 = vmatpush.msra.mxu1 %v1163_v25  ;;  %v1939_v24 = vld [vmem:[%s2524_s1 + $0x54] sm:$0xf]  ;;  %v1722_v25 = vld [vmem:[#allocation2 + $0x1a0] sm:$0xff] }
  0xdf   : > { %v1214_v33 = vpop.permute.xlu1 %1213  ;;  %v1212_v32 = vpop.permute.xlu0 %1211  ;;  %1925 = vmatmul.msk.f32.vlgmr.msra.gmra.mxu0 %vm235_vm3, %v1924_v29  ;;  %1926 = vmatmul.msk.f32.vlgmr.msra.gmra.mxu1 %vm235_vm3, %v1924_v29  ;;  %v1670_v29 = vld [vmem:[#allocation2 + $0x190] sm:$0xff] }
  0xe0   : > { %v1216_v34 = vsel %vm1215_vm0, %v1212_v32, %v1214_v33  ;;  %v1217_v35 = vsel %vm1215_vm0, %v1214_v33, %v1212_v32  ;;  %v1561_v0 = vpop.permute.xlu2 %1560 }
  0xe1   : > { %v1221_v36 = vmul.f32 %v1219_v30, %v1216_v34  ;;  %v1222_v37 = vmul.f32 %v1220_v31, %v1217_v35  ;;  %v1671_v30 = vld [vmem:[#allocation2 + $0x198] sm:$0xff] }
  0xe2   : > { %v1945_v35 = vld [vmem:[%s2524_s1 + $0x5c] sm:$0xf] }
  0xe3   : > { %1243 = vmatpush.msra.mxu2 %v1221_v36  ;;  %1263 = vmatpush.msra.mxu3 %v1222_v37  ;;  %v1948_v36 = vld [vmem:[%s2524_s1 + $0x60] sm:$0xf]  ;;  %v1951_v37 = vld [vmem:[%s2524_s1 + $0x64] sm:$0xf] }
  0xe4   : > { %1928 = vmatmul.msk.f32.vlgmr.msra.gmra.mxu2 %vm235_vm3, %v1927_v38  ;;  %1929 = vmatmul.msk.f32.vlgmr.msra.gmra.mxu3 %vm235_vm3, %v1927_v38  ;;  %v1954_v38 = vld [vmem:[%s2524_s1 + $0x68] sm:$0xf] }
  0xe7   : > { %v1330_v42 = vpop.permute.xlu1 %1329  ;;  %v1273_v45 = vpop.permute.xlu0 %1272 }
  0xe8   : > { %v2433_v46 = vsel %vm1333_vm1, %v1330_v42, %v1332_v39  ;;  %v2435_v47 = vsel %vm1333_vm1, %v1332_v39, %v1330_v42  ;;  %v1275_v48 = vsel %vm1274_vm2, %v1271_v17, %v1273_v45  ;;  %v1276_v49 = vsel %vm1274_vm2, %v1273_v45, %v1271_v17 }
  0xe9   : > { %v1339_v50 = vmul.f32 %v1337_v40, %v2435_v47  ;;  %v1340_v51 = vmul.f32 %v1338_v41, %v2433_v46  ;;  %v1280_v52 = vmul.f32 %v1278_v43, %v1276_v49  ;;  %v1281_v53 = vmul.f32 %v1279_v44, %v1275_v48 }
  0xea   : > { %v1620_v11 = vmul.f32 %v1618_v5, %v1275_v48  ;;  %v1621_v12 = vmul.f32 %v1619_v7, %v1276_v49  ;;  %v1672_v32 = vmul.f32 %v1670_v29, %v2433_v46  ;;  %v1673_v34 = vmul.f32 %v1671_v30, %v2435_v47 }
  0xeb   : > { %1361 = vmatpush.msrb.mxu2 %v1339_v50  ;;  %1381 = vmatpush.msrb.mxu3 %v1340_v51 }
  0xec   : > { %1302 = vmatpush.msrb.mxu0 %v1280_v52  ;;  %1322 = vmatpush.msrb.mxu1 %v1281_v53 }
  0xed   : > { %1931 = vmatmul.msk.f32.vlgmr.msrb.gmra.mxu0 %vm235_vm3, %v1930_v54  ;;  %1932 = vmatmul.msk.f32.vlgmr.msrb.gmra.mxu1 %vm235_vm3, %v1930_v54 }
  0xee   : > { %1934 = vmatmul.msk.f32.vlgmr.msrb.gmra.mxu2 %vm235_vm3, %v1933_v55  ;;  %1935 = vmatmul.msk.f32.vlgmr.msrb.gmra.mxu3 %vm235_vm3, %v1933_v55 }
  0xef   : > { %v1391_v61 = vpop.permute.xlu1 %1390  ;;  %v1389_v62 = vpop.permute.xlu0 %1388 }
  0xf0   : > { %v1393_v63 = vsel %vm1392_vm4, %v1389_v62, %v1391_v61  ;;  %v1394_v2 = vsel %vm1392_vm4, %v1391_v61, %v1389_v62 }
  0xf1   : > { %v1398_v8 = vmul.f32 %v1396_v59, %v1394_v2  ;;  %v1399_v9 = vmul.f32 %v1397_v60, %v1393_v63  ;;  %v1724_v31 = vmul.f32 %v1722_v25, %v1393_v63  ;;  %v1725_v33 = vmul.f32 %v1723_v6, %v1394_v2 }
  0xf3   : > { %1420 = vmatpush.msra.mxu0 %v1398_v8  ;;  %1440 = vmatpush.msra.mxu1 %v1399_v9 }
  0xf5   : > { %1531 = vmatpush.msrb.mxu0 %v1509_v3  ;;  %1551 = vmatpush.msrb.mxu1 %v1510_v4 }
  0xf6   : > { %1937 = vmatmul.msk.f32.vlgmr.msra.gmra.mxu0 %vm235_vm3, %v1936_v10  ;;  %1938 = vmatmul.msk.f32.vlgmr.msra.gmra.mxu1 %vm235_vm3, %v1936_v10 }
  0xf7   : > { %1642 = vmatpush.msra.mxu0 %v1620_v11  ;;  %1662 = vmatpush.msra.mxu1 %v1621_v12  ;;  %v1450_v14 = vpop.permute.xlu0 %1449  ;;  %v1559_v17 = vpop.permute.xlu1 %1558 }
  0xf8   : > { %v1452_v18 = vsel %vm1451_vm5, %v1448_v56, %v1450_v14  ;;  %v1453_v19 = vsel %vm1451_vm5, %v1450_v14, %v1448_v56  ;;  %v1563_v20 = vsel %vm1562_vm6, %v1559_v17, %v1561_v0  ;;  %v1564_v21 = vsel %vm1562_vm6, %v1561_v0, %v1559_v17 }
  0xf9   : > { %v1457_v22 = vmul.f32 %v1455_v1, %v1453_v19  ;;  %v1458_v23 = vmul.f32 %v1456_v13, %v1452_v18  ;;  %v1568_v26 = vmul.f32 %v1566_v15, %v1563_v20  ;;  %v1569_v27 = vmul.f32 %v1567_v16, %v1564_v21 }
  0xfb   : > { %1479 = vmatpush.msra.mxu2 %v1457_v22  ;;  %1499 = vmatpush.msra.mxu3 %v1458_v23 }
  0xfc   : > { %1940 = vmatmul.msk.f32.vlgmr.msra.gmra.mxu2 %vm235_vm3, %v1939_v24  ;;  %1941 = vmatmul.msk.f32.vlgmr.msra.gmra.mxu3 %vm235_vm3, %v1939_v24 }
  0xfd   : > { %1590 = vmatpush.msrb.mxu2 %v1568_v26  ;;  %1610 = vmatpush.msrb.mxu3 %v1569_v27 }
  0xfe   : > { %1943 = vmatmul.msk.f32.vlgmr.msrb.gmra.mxu0 %vm235_vm3, %v1942_v28  ;;  %1944 = vmatmul.msk.f32.vlgmr.msrb.gmra.mxu1 %vm235_vm3, %v1942_v28 }
  0xff   : > { %1746 = vmatpush.msrb.mxu0 %v1724_v31  ;;  %1766 = vmatpush.msrb.mxu1 %v1725_v33  ;;  %v219_v53 = vpop.permute.xlu0 %218 }
 0x100   : > { %1694 = vmatpush.msra.mxu2 %v1672_v32  ;;  %1714 = vmatpush.msra.mxu3 %v1673_v34 }
 0x104   : > { %1946 = vmatmul.msk.f32.vlgmr.msrb.gmra.mxu2 %vm235_vm3, %v1945_v35  ;;  %1947 = vmatmul.msk.f32.vlgmr.msrb.gmra.mxu3 %vm235_vm3, %v1945_v35 }
 0x106   : > { %1949 = vmatmul.msk.f32.vlgmr.msra.gmra.mxu0 %vm235_vm3, %v1948_v36  ;;  %1950 = vmatmul.msk.f32.vlgmr.msra.gmra.mxu1 %vm235_vm3, %v1948_v36 }
 0x10c   : > { %1952 = vmatmul.msk.f32.vlgmr.msra.gmra.mxu2 %vm235_vm3, %v1951_v37  ;;  %1953 = vmatmul.msk.f32.vlgmr.msra.gmra.mxu3 %vm235_vm3, %v1951_v37 }
 0x10e   : > { %1955 = vmatmul.msk.f32.vlgmr.msrb.gmra.mxu0 %vm235_vm3, %v1954_v38  ;;  %1956 = vmatmul.msk.f32.vlgmr.msrb.gmra.mxu1 %vm235_vm3, %v1954_v38  ;;  %vm1776_vm3 = vcmask 1043456  }
 0x11b   : > { %v276_v39 = vpop.f32.mrf.mxu1 }
 0x11c   : > { %v256_v40 = vpop.f32.mrf.mxu0  ;;  %v280_v59 = vadd.f32 %v276_v39, %v219_v53 }
 0x11d   : > { %v279_v58 = vadd.f32 %v256_v40, %v219_v53 }
 0x121   : > { %v335_v41 = vpop.f32.mrf.mxu3 }
 0x122   : > { %v315_v42 = vpop.f32.mrf.mxu2  ;;  %v339_v61 = vadd.f32 %v335_v41, %v280_v59 }
 0x123   : > { %v394_v43 = vpop.f32.mrf.mxu1  ;;  %v338_v60 = vadd.f32 %v315_v42, %v279_v58 }
 0x124   : > { %v374_v44 = vpop.f32.mrf.mxu0  ;;  %v398_v3 = vadd.f32 %v394_v43, %v339_v61 }
 0x125   : > { %v397_v2 = vadd.f32 %v374_v44, %v338_v60 }
 0x129   : > { %v453_v45 = vpop.f32.mrf.mxu3 }
 0x12a   : > { %v433_v46 = vpop.f32.mrf.mxu2  ;;  %v457_v7 = vadd.f32 %v453_v45, %v398_v3 }
 0x12b   : > { %v505_v47 = vpop.f32.mrf.mxu1  ;;  %v456_v8 = vadd.f32 %v433_v46, %v397_v2 }
 0x12c   : > { %v485_v48 = vpop.f32.mrf.mxu0  ;;  %v509_v11 = vadd.f32 %v505_v47, %v457_v7 }
 0x12d   : > { %v508_v12 = vadd.f32 %v485_v48, %v456_v8 }
 0x131   : > { %v564_v49 = vpop.f32.mrf.mxu3 }
 0x132   : > { %v544_v50 = vpop.f32.mrf.mxu2  ;;  %v568_v13 = vadd.f32 %v564_v49, %v509_v11 }
 0x133   : > { %v623_v51 = vpop.f32.mrf.mxu1  ;;  %v567_v14 = vadd.f32 %v544_v50, %v508_v12 }
 0x134   : > { %v603_v52 = vpop.f32.mrf.mxu0  ;;  %v627_v15 = vadd.f32 %v623_v51, %v568_v13 }
 0x135   : > { %v626_v16 = vadd.f32 %v603_v52, %v567_v14 }
 0x139   : > { %v682_v56 = vpop.f32.mrf.mxu3 }
 0x13a   : > { %v662_v57 = vpop.f32.mrf.mxu2  ;;  %v686_v21 = vadd.f32 %v682_v56, %v627_v15 }
 0x13b   : > { %v741_v54 = vpop.f32.mrf.mxu1  ;;  %v685_v22 = vadd.f32 %v662_v57, %v626_v16 }
 0x13c   : > { %v721_v55 = vpop.f32.mrf.mxu0  ;;  %v745_v23 = vadd.f32 %v741_v54, %v686_v21 }
 0x13d   : > { %v744_v24 = vadd.f32 %v721_v55, %v685_v22 }
 0x141   : > { %v800_v4 = vpop.f32.mrf.mxu3 }
 0x142   : > { %v780_v5 = vpop.f32.mrf.mxu2  ;;  %v804_v25 = vadd.f32 %v800_v4, %v745_v23 }
 0x143   : > { %v859_v62 = vpop.f32.mrf.mxu1  ;;  %v803_v6 = vadd.f32 %v780_v5, %v744_v24 }
 0x144   : > { %v839_v63 = vpop.f32.mrf.mxu0  ;;  %v863_v30 = vadd.f32 %v859_v62, %v804_v25 }
 0x145   : > { %v862_v31 = vadd.f32 %v839_v63, %v803_v6 }
 0x14c   : > { %v957_v9 = vpop.f32.mrf.mxu0  ;;  %v977_v10 = vpop.f32.mrf.mxu1 }
 0x14f   : > { %v898_v0 = vpop.f32.mrf.mxu2  ;;  %v918_v1 = vpop.f32.mrf.mxu3 }
 0x150   : > { %v921_v33 = vadd.f32 %v898_v0, %v862_v31  ;;  %v922_v32 = vadd.f32 %v918_v1, %v863_v30 }
 0x152   : > { %v980_v34 = vadd.f32 %v957_v9, %v921_v33  ;;  %v981_v35 = vadd.f32 %v977_v10, %v922_v32 }
 0x154   : > { %v1068_v17 = vpop.f32.mrf.mxu0  ;;  %v1088_v18 = vpop.f32.mrf.mxu1 }
 0x157   : > { %v1009_v19 = vpop.f32.mrf.mxu2  ;;  %v1029_v20 = vpop.f32.mrf.mxu3 }
 0x158   : > { %v1032_v38 = vadd.f32 %v1009_v19, %v980_v34  ;;  %v1033_v39 = vadd.f32 %v1029_v20, %v981_v35 }
 0x15a   : > { %v1091_v42 = vadd.f32 %v1068_v17, %v1032_v38  ;;  %v1092_v43 = vadd.f32 %v1088_v18, %v1033_v39 }
 0x15c   : > { %v1186_v26 = vpop.f32.mrf.mxu0  ;;  %v1206_v27 = vpop.f32.mrf.mxu1 }
 0x15f   : > { %v1127_v28 = vpop.f32.mrf.mxu2  ;;  %v1147_v29 = vpop.f32.mrf.mxu3 }
 0x160   : > { %v1150_v44 = vadd.f32 %v1127_v28, %v1091_v42  ;;  %v1151_v45 = vadd.f32 %v1147_v29, %v1092_v43 }
 0x162   : > { %v1209_v48 = vadd.f32 %v1186_v26, %v1150_v44  ;;  %v1210_v49 = vadd.f32 %v1206_v27, %v1151_v45 }
 0x167   : > { %v1245_v40 = vpop.f32.mrf.mxu2  ;;  %v1265_v41 = vpop.f32.mrf.mxu3 }
 0x168   : > { %v1268_v52 = vadd.f32 %v1245_v40, %v1209_v48  ;;  %v1269_v53 = vadd.f32 %v1265_v41, %v1210_v49 }
 0x16a   : > { %v1304_v36 = vpop.f32.mrf.mxu0  ;;  %v1324_v37 = vpop.f32.mrf.mxu1 }
 0x16b   : > { %v1327_v55 = vadd.f32 %v1304_v36, %v1268_v52  ;;  %v1328_v56 = vadd.f32 %v1324_v37, %v1269_v53 }
 0x171   : > { %v1363_v50 = vpop.f32.mrf.mxu2  ;;  %v1383_v51 = vpop.f32.mrf.mxu3 }
 0x172   : > { %v1386_v58 = vadd.f32 %v1363_v50, %v1327_v55  ;;  %v1387_v59 = vadd.f32 %v1383_v51, %v1328_v56 }
 0x173   : > { %v1442_v46 = vpop.f32.mrf.mxu1  ;;  %v1422_v47 = vpop.f32.mrf.mxu0 }
 0x174   : > { %v1445_v62 = vadd.f32 %v1422_v47, %v1386_v58  ;;  %v1446_v63 = vadd.f32 %v1442_v46, %v1387_v59 }
 0x17b   : > { %v1553_v54 = vpop.f32.mrf.mxu1  ;;  %v1533_v57 = vpop.f32.mrf.mxu0 }
 0x17f   : > { %v1481_v60 = vpop.f32.mrf.mxu2  ;;  %v1501_v61 = vpop.f32.mrf.mxu3 }
 0x180   : > { %v1504_v2 = vadd.f32 %v1481_v60, %v1445_v62  ;;  %v1505_v3 = vadd.f32 %v1501_v61, %v1446_v63 }
 0x182   : > { %v1556_v9 = vadd.f32 %v1533_v57, %v1504_v2  ;;  %v1557_v10 = vadd.f32 %v1553_v54, %v1505_v3 }
 0x183   : > { %v1664_v4 = vpop.f32.mrf.mxu1  ;;  %v1644_v5 = vpop.f32.mrf.mxu0 }
 0x187   : > { %v1592_v7 = vpop.f32.mrf.mxu2  ;;  %v1612_v8 = vpop.f32.mrf.mxu3 }
 0x188   : > { %v1615_v11 = vadd.f32 %v1592_v7, %v1556_v9  ;;  %v1616_v12 = vadd.f32 %v1612_v8, %v1557_v10 }
 0x18a   : > { %v1667_v0 = vadd.f32 %v1644_v5, %v1615_v11  ;;  %v1668_v1 = vadd.f32 %v1664_v4, %v1616_v12 }
 0x18b   : > { %v1768_v13 = vpop.f32.mrf.mxu1  ;;  %v1748_v18 = vpop.f32.mrf.mxu0 }
 0x18f   : > { %v1696_v14 = vpop.f32.mrf.mxu2  ;;  %v1716_v15 = vpop.f32.mrf.mxu3 }
 0x190   : > { %v1719_v16 = vadd.f32 %v1696_v14, %v1667_v0  ;;  %v1720_v17 = vadd.f32 %v1716_v15, %v1668_v1 }
 0x192   : > { %v1772_v19 = vadd.f32 %v1768_v13, %v1720_v17  ;;  %v1771_v20 = vadd.f32 %v1748_v18, %v1719_v16 }
 0x194   : > { %v1775_v21 = vrot.slane %v1772_v19, 4 }
 0x196   : > { %v1777_v22 = vsel %vm1776_vm3, %v1771_v20, %v1775_v21 }
 0x197   : > { %1779 = vst [vmem:[%s207_s11] sm:$0xff] %v1777_v22 }
 0x198   : > { %2096 = shalt.err (!%p2093_p8)
}
 0x199   : > { %1968 = dma.vmem_to_hbm [thread:$0]  (%p2225_p5), %s1795_s12, 128, %s1797_s13, %s1781_s19  }
 0x19a PF: > { %p1980_p9 = scmp.ge.s32.totalorder %s2135_s18, 2  ;;  %s1808_s30 = sand.u32 1, %s2123_s15  }
 0x19b   : > { %s1809_s5 = scalar_lea.sflag [#allocation4], %s1808_s30 }
 0x19c   : > { %p1975_p10 = pnand %p1980_p9, %p2229_p6 }
 0x19e   : > { %p1976_p11 = pneg %p1975_p10 }
 0x1a0   : > { %2118 = dma.done.wait (%p1976_p11), %s1809_s5, 128  }
 0x1a1   : > { %2120 = vsyncadd (%p1976_p11), %s1809_s5, 4294967168  ;;  %p15_p12 = scmp.ge.s32.totalorder %s2212_s21, 4   ;;  %s2530_s15 = smov %s2127_s16 }
 0x1a2   : > { %s2531_s16 = smov %s2131_s17  ;;  %s2532_s17 = smov %s2223_s24 }
 0x1a3   : > { %s2533_s18 = smov %s2212_s21  ;;  %17 = sbr.rel (!%p15_p12) target bundleno = 4 (0x4), region = 128 }
 0x1a8   :  { %1815 = vsyncpa [#allocation3], 1 }
 0x1a9   :  { %1817 = vsyncpa [#allocation3 + $0x1], 1 }
 0x1aa   :  { %1818 = vsyncpa [#allocation4], 1 }
 0x1ab   :  { %1820 = vsyncpa [#allocation4 + $0x1], 1 }

</bundles_post_ra>
